<compile_context>
chip_gen: v6e
topology: v6e:2x2x1
jax: 0.10.0
libtpu: 0.0.40
codegen_flags: <defaults>
</compile_context>

<pallas_src>
import math

import jax
import jax.numpy as jnp
from jax.experimental import pallas as pl
from jax.experimental.pallas import tpu as pltpu

d_k = 64
d_v = 64
d_model = 32
n_heads = 8
d_ff = 2048
LN_EPS = 1e-5


def _layer_norm_rows(y):
    """LayerNorm over last dim, gamma=1 / beta=0 / eps=1e-5 (fresh torch.nn.LayerNorm)."""
    mean = jnp.mean(y, axis=-1, keepdims=True)
    c = y - mean
    var = jnp.mean(c * c, axis=-1, keepdims=True)
    return c * jax.lax.rsqrt(var + LN_EPS)


# ---------------------------------------------------------------------------
# Fused EncoderLayer kernel: one batch element per grid step
# ---------------------------------------------------------------------------
def encoder_layer_kernel(x_ref, wqkv_ref, wo_ref, w1_ref, w2_ref, out_ref, attn_ref):
    # x_ref:    [1, L, d_model]            f32
    # wqkv_ref: [H, d_model, 3*d_k]        bf16 (Q|K|V fused per head), VMEM-resident
    # wo_ref:   [H, d_v, d_model]          bf16, VMEM-resident
    # w1_ref:   [d_model, d_ff]            bf16, VMEM-resident
    # w2_ref:   [d_ff, d_model]            bf16, VMEM-resident
    x = x_ref[0].astype(jnp.float32)                     # [L, d_model]
    l = x.shape[0]
    x_bf = x.astype(jnp.bfloat16)

    # ---- fused QKV projection: one head-batched bf16 matmul, f32 accumulate ----
    x_b = jnp.broadcast_to(x_bf[None, :, :], (n_heads, l, d_model))   # [H, L, D]
    qkv = jnp.einsum("hld,hdn->hln", x_b, wqkv_ref[...],
                     preferred_element_type=jnp.float32)              # [H, L, 3*d_k]
    q = qkv[:, :, 0:d_k]                                              # [H, L, d_k]
    k = qkv[:, :, d_k:2 * d_k]                                        # [H, L, d_k]
    v = qkv[:, :, 2 * d_k:3 * d_k]                                    # [H, L, d_v]

    # ---- scaled dot-product attention, batched over heads ----
    s = jnp.einsum("hld,hmd->hlm",
                   q.astype(jnp.bfloat16), k.astype(jnp.bfloat16),
                   preferred_element_type=jnp.float32) * (1.0 / math.sqrt(d_k))
    # NOTE: attn_mask is NOT applied — the PyTorch reference never applies it either.
    s = s - jnp.max(s, axis=-1, keepdims=True)
    e = jnp.exp(s)
    p = e * pl.reciprocal(jnp.sum(e, axis=-1, keepdims=True), approx=True)   # [H, L, L]
    attn_ref[0] = p.astype(attn_ref.dtype)

    ctx = jnp.einsum("hlm,hmd->hld",
                     p.astype(jnp.bfloat16), v.astype(jnp.bfloat16),
                     preferred_element_type=jnp.float32)              # [H, L, d_v]
    o_h = jnp.einsum("hld,hdm->hlm",
                     ctx.astype(jnp.bfloat16), wo_ref[...],
                     preferred_element_type=jnp.float32)              # [H, L, d_model]
    y1 = _layer_norm_rows(jnp.sum(o_h, axis=0) + x)                   # [L, d_model]

    # ---- position-wise FFN + residual + LayerNorm ----
    h = jnp.dot(y1.astype(jnp.bfloat16), w1_ref[...],
                preferred_element_type=jnp.float32)                   # [L, d_ff] f32
    h = jnp.maximum(h, 0.0)                                           # f32 relu (v5e-safe)
    y2 = jnp.dot(h.astype(jnp.bfloat16), w2_ref[...],
                 preferred_element_type=jnp.float32) + y1             # [L, d_model]
    out_ref[0] = _layer_norm_rows(y2).astype(out_ref.dtype)


# ---------------------------------------------------------------------------
# Wrapper
# ---------------------------------------------------------------------------
def prepare_encoder_weights(wq, wk, wv, wo, w1, w2):
    """One-time layout/cast prep (hoist out of the per-forward path).

    wq/wk/wv: [d_model, H*d_k] ; wo: [H*d_v, d_model] ; w1: [d_model, d_ff] ; w2: [d_ff, d_model]
    """
    wq_h = wq.reshape(d_model, n_heads, d_k).transpose(1, 0, 2)     # [H, D, d_k]
    wk_h = wk.reshape(d_model, n_heads, d_k).transpose(1, 0, 2)
    wv_h = wv.reshape(d_model, n_heads, d_v).transpose(1, 0, 2)
    wqkv = jnp.concatenate([wq_h, wk_h, wv_h], axis=-1).astype(jnp.bfloat16)  # [H, D, 3*d_k]
    wo_h = wo.reshape(n_heads, d_v, d_model).astype(jnp.bfloat16)             # [H, d_v, D]
    return wqkv, wo_h, w1.astype(jnp.bfloat16), w2.astype(jnp.bfloat16)


def encoder_layer(enc_inputs, enc_self_attn_mask, params):
    """enc_inputs: [B, L, d_model]; params = prepare_encoder_weights(...)."""
    # The PyTorch ScaledDotProductAttention takes attn_mask but never applies it.
    del enc_self_attn_mask
    wqkv, wo_h, w1, w2 = params
    b, l, dm = enc_inputs.shape
    assert dm == d_model

    flops = b * (2 * n_heads * l * d_model * 3 * d_k      # QKV projection
                 + 2 * n_heads * l * l * d_k               # scores
                 + 2 * n_heads * l * l * d_v               # context
                 + 2 * n_heads * l * d_v * d_model         # output projection
                 + 4 * l * d_model * d_ff)                 # FFN (two matmuls)
    transcendentals = b * (n_heads * l * l + 2 * l)        # exp + rsqrt per row
    bytes_accessed = (2 * enc_inputs.size * enc_inputs.dtype.itemsize
                      + b * n_heads * l * l * 4
                      + 2 * (wqkv.size + wo_h.size + w1.size + w2.size))
    cost = pl.CostEstimate(flops=int(flops),
                           transcendentals=int(transcendentals),
                           bytes_accessed=int(bytes_accessed))

    out, attn = pl.pallas_call(
        encoder_layer_kernel,
        out_shape=(
            jax.ShapeDtypeStruct((b, l, dm), enc_inputs.dtype),
            jax.ShapeDtypeStruct((b, n_heads, l, l), jnp.float32),
        ),
        grid_spec=pltpu.PrefetchScalarGridSpec(
            num_scalar_prefetch=0,
            grid=(b,),
            in_specs=[
                pl.BlockSpec((1, l, dm), lambda i: (i, 0, 0)),
                pl.BlockSpec((n_heads, dm, 3 * d_k), lambda i: (0, 0, 0)),  # resident
                pl.BlockSpec((n_heads, d_v, dm), lambda i: (0, 0, 0)),      # resident
                pl.BlockSpec((dm, d_ff), lambda i: (0, 0)),                 # resident
                pl.BlockSpec((d_ff, dm), lambda i: (0, 0)),                 # resident
            ],
            out_specs=[
                pl.BlockSpec((1, l, dm), lambda i: (i, 0, 0)),
                pl.BlockSpec((1, n_heads, l, l), lambda i: (i, 0, 0, 0)),
            ],
        ),
        compiler_params=pltpu.CompilerParams(
            dimension_semantics=("parallel",),          # batch elements shard across TCs
            vmem_limit_bytes=32 * 1024 * 1024),
        cost_estimate=cost,
    )(enc_inputs, wqkv, wo_h, w1, w2)
    return out, attn


# ---------------------------------------------------------------------------
# Pure-JAX reference (f32, HIGHEST precision; weights are bf16-representable so
# only activation-cast differences remain in the comparison)
# ---------------------------------------------------------------------------
def reference(x, wq, wk, wv, wo, w1, w2):
    hp = jax.lax.Precision.HIGHEST
    b, l, _ = x.shape
    q = jnp.dot(x, wq, precision=hp).reshape(b, l, n_heads, d_k).transpose(0, 2, 1, 3)
    k = jnp.dot(x, wk, precision=hp).reshape(b, l, n_heads, d_k).transpose(0, 2, 1, 3)
    v = jnp.dot(x, wv, precision=hp).reshape(b, l, n_heads, d_v).transpose(0, 2, 1, 3)
    s = jnp.einsum("bhqd,bhkd->bhqk", q, k, precision=hp) / math.sqrt(d_k)
    p = jax.nn.softmax(s, axis=-1)
    ctx = jnp.einsum("bhqk,bhkd->bhqd", p, v, precision=hp)
    ctx = ctx.transpose(0, 2, 1, 3).reshape(b, l, n_heads * d_v)
    y1 = _layer_norm_rows(jnp.dot(ctx, wo, precision=hp) + x)
    h = jnp.maximum(jnp.dot(y1, w1, precision=hp), 0.0)
    y2 = _layer_norm_rows(jnp.dot(h, w2, precision=hp) + y1)
    return y2, p


if __name__ == "__main__":
    key = jax.random.PRNGKey(0)
    ks = jax.random.split(key, 7)
    batch, seq = 2, 8

    def _bf16_round(w):
        # Make weights exactly bf16-representable so kernel (bf16) and reference (f32)
        # use numerically identical weights; only activation casts differ.
        return w.astype(jnp.bfloat16).astype(jnp.float32)

    x = jax.random.normal(ks[0], (batch, seq, d_model), jnp.float32)
    # Part of the PyTorch interface; never applied by the module's forward.
    attn_mask = jnp.zeros((batch, seq, seq), dtype=jnp.bool_)

    w_scale = 0.05
    wq = _bf16_round(jax.random.normal(ks[1], (d_model, n_heads * d_k), jnp.float32) * w_scale)
    wk = _bf16_round(jax.random.normal(ks[2], (d_model, n_heads * d_k), jnp.float32) * w_scale)
    wv = _bf16_round(jax.random.normal(ks[3], (d_model, n_heads * d_v), jnp.float32) * w_scale)
    wo = _bf16_round(jax.random.normal(ks[4], (n_heads * d_v, d_model), jnp.float32) * w_scale)
    w1 = _bf16_round(jax.random.normal(ks[5], (d_model, d_ff), jnp.float32) * w_scale)
    w2 = _bf16_round(jax.random.normal(ks[6], (d_ff, d_model), jnp.float32) * w_scale)

    params = prepare_encoder_weights(wq, wk, wv, wo, w1, w2)   # one-time prep
    out, attn = encoder_layer(x, attn_mask, params)
    out = jax.block_until_ready(out)
    attn = jax.block_until_ready(attn)

    ref_out, ref_attn = reference(x, wq, wk, wv, wo, w1, w2)

    assert out.shape == (batch, seq, d_model)
    assert attn.shape == (batch, n_heads, seq, seq)
    assert jnp.allclose(attn, ref_attn, atol=5e-3, rtol=5e-3)
    assert jnp.allclose(out, ref_out, atol=2e-2, rtol=2e-2)

    print("KERNEL_OK")
</pallas_src>

<mosaic_0001>
module attributes {stable_mosaic.version = 11 : i64} {
  func.func @encoder_layer_kernel(%arg0: i32, %arg1: memref<1x8x32xf32, #tpu.memory_space<vmem>>, %arg2: memref<8x32x192xbf16, #tpu.memory_space<vmem>>, %arg3: memref<8x64x32xbf16, #tpu.memory_space<vmem>>, %arg4: memref<32x2048xbf16, #tpu.memory_space<vmem>>, %arg5: memref<2048x32xbf16, #tpu.memory_space<vmem>>, %arg6: memref<1x8x32xf32, #tpu.memory_space<vmem>>, %arg7: memref<1x8x8x8xf32, #tpu.memory_space<vmem>>) attributes {dimension_semantics = [#tpu.dimension_semantics<parallel>], iteration_bounds = array<i64: 2>, scalar_prefetch = 0 : i64, scratch_operands = 0 : i64, tpu.core_type = #tpu.core_type<tc>, window_params = [{transform_indices = @transform_0, window_bounds = array<i64: 1, 8, 32>}, {pipeline_mode = #tpu.pipeline_mode<synchronous>, transform_indices = @transform_1, window_bounds = array<i64: 8, 32, 192>}, {pipeline_mode = #tpu.pipeline_mode<synchronous>, transform_indices = @transform_2, window_bounds = array<i64: 8, 64, 32>}, {pipeline_mode = #tpu.pipeline_mode<synchronous>, transform_indices = @transform_3, window_bounds = array<i64: 32, 2048>}, {pipeline_mode = #tpu.pipeline_mode<synchronous>, transform_indices = @transform_4, window_bounds = array<i64: 2048, 32>}, {transform_indices = @transform_5, window_bounds = array<i64: 1, 8, 32>}, {transform_indices = @transform_6, window_bounds = array<i64: 1, 8, 8, 8>}]} {
    %c0 = arith.constant 0 : index
    %c0_0 = arith.constant 0 : index
    %c0_1 = arith.constant 0 : index
    %0 = vector.load %arg1[%c0, %c0_0, %c0_1] : memref<1x8x32xf32, #tpu.memory_space<vmem>>, vector<1x8x32xf32>
    %1 = vector.shape_cast %0 : vector<1x8x32xf32> to vector<8x32xf32>
    %2 = arith.truncf %1 : vector<8x32xf32> to vector<8x32xbf16>
    %3 = vector.shape_cast %2 : vector<8x32xbf16> to vector<1x8x32xbf16>
    %4 = vector.shape_cast %3 : vector<1x8x32xbf16> to vector<1x8x32xbf16>
    %5 = vector.broadcast %4 : vector<1x8x32xbf16> to vector<8x8x32xbf16>
    %c0_2 = arith.constant 0 : index
    %c0_3 = arith.constant 0 : index
    %c0_4 = arith.constant 0 : index
    %6 = vector.load %arg2[%c0_2, %c0_3, %c0_4] : memref<8x32x192xbf16, #tpu.memory_space<vmem>>, vector<8x32x192xbf16>
    "tpu.trace_start"() <{level = 10 : i32, message = "hld,hdn->hln"}> : () -> ()
    %cst = arith.constant dense<0.000000e+00> : vector<8x8x192xf32>
    %7 = tpu.matmul %5, %6, %cst {dimension_numbers = #tpu.dot_dimension_numbers<[2], [1], [1], [2], [0, 0, 0, 1, 1, 2], [0], [0]>} : vector<8x8x32xbf16>, vector<8x32x192xbf16>, vector<8x8x192xf32> -> vector<8x8x192xf32>
    "tpu.trace_stop"() : () -> ()
    %8 = vector.extract_strided_slice %7 {offsets = [0, 0, 0], sizes = [8, 8, 64], strides = [1, 1, 1]} : vector<8x8x192xf32> to vector<8x8x64xf32>
    %9 = vector.extract_strided_slice %7 {offsets = [0, 0, 64], sizes = [8, 8, 64], strides = [1, 1, 1]} : vector<8x8x192xf32> to vector<8x8x64xf32>
    %10 = vector.extract_strided_slice %7 {offsets = [0, 0, 128], sizes = [8, 8, 64], strides = [1, 1, 1]} : vector<8x8x192xf32> to vector<8x8x64xf32>
    %11 = arith.truncf %8 : vector<8x8x64xf32> to vector<8x8x64xbf16>
    %12 = arith.truncf %9 : vector<8x8x64xf32> to vector<8x8x64xbf16>
    "tpu.trace_start"() <{level = 10 : i32, message = "hld,hmd->hlm"}> : () -> ()
    %cst_5 = arith.constant dense<0.000000e+00> : vector<8x8x8xf32>
    %13 = tpu.matmul %11, %12, %cst_5 {dimension_numbers = #tpu.dot_dimension_numbers<[2], [2], [1], [1], [0, 0, 0, 1, 1, 1], [0], [0]>} : vector<8x8x64xbf16>, vector<8x8x64xbf16>, vector<8x8x8xf32> -> vector<8x8x8xf32>
    "tpu.trace_stop"() : () -> ()
    %cst_6 = arith.constant 1.250000e-01 : f32
    %14 = vector.broadcast %cst_6 : f32 to vector<8x8x8xf32>
    %15 = arith.mulf %13, %14 : vector<8x8x8xf32>
    %cst_7 = arith.constant dense<0xFF800000> : vector<8x8xf32>
    %16 = vector.multi_reduction <maximumf>, %15, %cst_7 [2] : vector<8x8x8xf32> to vector<8x8xf32>
    %17 = vector.shape_cast %16 : vector<8x8xf32> to vector<8x8x1xf32>
    %18 = vector.broadcast %17 : vector<8x8x1xf32> to vector<8x8x8xf32>
    %19 = arith.subf %15, %18 : vector<8x8x8xf32>
    %20 = math.exp %19 : vector<8x8x8xf32>
    %cst_8 = arith.constant dense<0.000000e+00> : vector<8x8xf32>
    %21 = vector.multi_reduction <add>, %20, %cst_8 [2] : vector<8x8x8xf32> to vector<8x8xf32>
    %22 = vector.shape_cast %21 : vector<8x8xf32> to vector<8x8x1xf32>
    %23 = tpu.reciprocal %22 {approx = true} : vector<8x8x1xf32> -> vector<8x8x1xf32>
    %24 = vector.broadcast %23 : vector<8x8x1xf32> to vector<8x8x8xf32>
    %25 = arith.mulf %20, %24 : vector<8x8x8xf32>
    %c0_9 = arith.constant 0 : index
    %c0_10 = arith.constant 0 : index
    %c0_11 = arith.constant 0 : index
    %c0_12 = arith.constant 0 : index
    %26 = vector.load %arg7[%c0_9, %c0_10, %c0_11, %c0_12] : memref<1x8x8x8xf32, #tpu.memory_space<vmem>>, vector<1x8x8x8xf32>
    %27 = vector.shape_cast %26 : vector<1x8x8x8xf32> to vector<8x8x8xf32>
    %28 = vector.shape_cast %25 : vector<8x8x8xf32> to vector<1x8x8x8xf32>
    tpu.vector_store %arg7[%c0_9, %c0_10, %c0_11, %c0_12], %28 {strides = array<i32>} : memref<1x8x8x8xf32, #tpu.memory_space<vmem>>, vector<1x8x8x8xf32>,
    %29 = arith.truncf %25 : vector<8x8x8xf32> to vector<8x8x8xbf16>
    %30 = arith.truncf %10 : vector<8x8x64xf32> to vector<8x8x64xbf16>
    "tpu.trace_start"() <{level = 10 : i32, message = "hlm,hmd->hld"}> : () -> ()
    %cst_13 = arith.constant dense<0.000000e+00> : vector<8x8x64xf32>
    %31 = tpu.matmul %29, %30, %cst_13 {dimension_numbers = #tpu.dot_dimension_numbers<[2], [1], [1], [2], [0, 0, 0, 1, 1, 2], [0], [0]>} : vector<8x8x8xbf16>, vector<8x8x64xbf16>, vector<8x8x64xf32> -> vector<8x8x64xf32>
    "tpu.trace_stop"() : () -> ()
    %32 = arith.truncf %31 : vector<8x8x64xf32> to vector<8x8x64xbf16>
    %c0_14 = arith.constant 0 : index
    %c0_15 = arith.constant 0 : index
    %c0_16 = arith.constant 0 : index
    %33 = vector.load %arg3[%c0_14, %c0_15, %c0_16] : memref<8x64x32xbf16, #tpu.memory_space<vmem>>, vector<8x64x32xbf16>
    "tpu.trace_start"() <{level = 10 : i32, message = "hld,hdm->hlm"}> : () -> ()
    %cst_17 = arith.constant dense<0.000000e+00> : vector<8x8x32xf32>
    %34 = tpu.matmul %32, %33, %cst_17 {dimension_numbers = #tpu.dot_dimension_numbers<[2], [1], [1], [2], [0, 0, 0, 1, 1, 2], [0], [0]>} : vector<8x8x64xbf16>, vector<8x64x32xbf16>, vector<8x8x32xf32> -> vector<8x8x32xf32>
    "tpu.trace_stop"() : () -> ()
    %cst_18 = arith.constant dense<0.000000e+00> : vector<8x32xf32>
    %35 = vector.multi_reduction <add>, %34, %cst_18 [0] : vector<8x8x32xf32> to vector<8x32xf32>
    %36 = arith.addf %35, %1 : vector<8x32xf32>
    %cst_19 = arith.constant dense<0.000000e+00> : vector<8xf32>
    %37 = vector.multi_reduction <add>, %36, %cst_19 [1] : vector<8x32xf32> to vector<8xf32>
    %38 = vector.shape_cast %37 : vector<8xf32> to vector<8x1xf32>
    %cst_20 = arith.constant 3.200000e+01 : f32
    %39 = vector.broadcast %cst_20 : f32 to vector<8x1xf32>
    %40 = arith.divf %38, %39 : vector<8x1xf32>
    %41 = vector.broadcast %40 : vector<8x1xf32> to vector<8x32xf32>
    %42 = arith.subf %36, %41 : vector<8x32xf32>
    %43 = arith.mulf %42, %42 : vector<8x32xf32>
    %cst_21 = arith.constant dense<0.000000e+00> : vector<8xf32>
    %44 = vector.multi_reduction <add>, %43, %cst_21 [1] : vector<8x32xf32> to vector<8xf32>
    %45 = vector.shape_cast %44 : vector<8xf32> to vector<8x1xf32>
    %cst_22 = arith.constant 3.200000e+01 : f32
    %46 = vector.broadcast %cst_22 : f32 to vector<8x1xf32>
    %47 = arith.divf %45, %46 : vector<8x1xf32>
    %cst_23 = arith.constant 9.99999974E-6 : f32
    %48 = vector.broadcast %cst_23 : f32 to vector<8x1xf32>
    %49 = arith.addf %47, %48 : vector<8x1xf32>
    %50 = math.rsqrt %49 : vector<8x1xf32>
    %51 = vector.broadcast %50 : vector<8x1xf32> to vector<8x32xf32>
    %52 = arith.mulf %42, %51 : vector<8x32xf32>
    %53 = arith.truncf %52 : vector<8x32xf32> to vector<8x32xbf16>
    %c0_24 = arith.constant 0 : index
    %c0_25 = arith.constant 0 : index
    %54 = vector.load %arg4[%c0_24, %c0_25] : memref<32x2048xbf16, #tpu.memory_space<vmem>>, vector<32x2048xbf16>
    %cst_26 = arith.constant dense<0.000000e+00> : vector<8x2048xf32>
    %55 = tpu.matmul %53, %54, %cst_26 {dimension_numbers = #tpu.dot_dimension_numbers<[1], [0], [0], [1], [0, 0, 1, 1], [], []>} : vector<8x32xbf16>, vector<32x2048xbf16>, vector<8x2048xf32> -> vector<8x2048xf32>
    %cst_27 = arith.constant 0.000000e+00 : f32
    %56 = vector.broadcast %cst_27 : f32 to vector<8x2048xf32>
    %57 = arith.maximumf %55, %56 : vector<8x2048xf32>
    %58 = arith.truncf %57 : vector<8x2048xf32> to vector<8x2048xbf16>
    %c0_28 = arith.constant 0 : index
    %c0_29 = arith.constant 0 : index
    %59 = vector.load %arg5[%c0_28, %c0_29] : memref<2048x32xbf16, #tpu.memory_space<vmem>>, vector<2048x32xbf16>
    %cst_30 = arith.constant dense<0.000000e+00> : vector<8x32xf32>
    %60 = tpu.matmul %58, %59, %cst_30 {dimension_numbers = #tpu.dot_dimension_numbers<[1], [0], [0], [1], [0, 0, 1, 1], [], []>} : vector<8x2048xbf16>, vector<2048x32xbf16>, vector<8x32xf32> -> vector<8x32xf32>
    %61 = arith.addf %60, %52 : vector<8x32xf32>
    %cst_31 = arith.constant dense<0.000000e+00> : vector<8xf32>
    %62 = vector.multi_reduction <add>, %61, %cst_31 [1] : vector<8x32xf32> to vector<8xf32>
    %63 = vector.shape_cast %62 : vector<8xf32> to vector<8x1xf32>
    %cst_32 = arith.constant 3.200000e+01 : f32
    %64 = vector.broadcast %cst_32 : f32 to vector<8x1xf32>
    %65 = arith.divf %63, %64 : vector<8x1xf32>
    %66 = vector.broadcast %65 : vector<8x1xf32> to vector<8x32xf32>
    %67 = arith.subf %61, %66 : vector<8x32xf32>
    %68 = arith.mulf %67, %67 : vector<8x32xf32>
    %cst_33 = arith.constant dense<0.000000e+00> : vector<8xf32>
    %69 = vector.multi_reduction <add>, %68, %cst_33 [1] : vector<8x32xf32> to vector<8xf32>
    %70 = vector.shape_cast %69 : vector<8xf32> to vector<8x1xf32>
    %cst_34 = arith.constant 3.200000e+01 : f32
    %71 = vector.broadcast %cst_34 : f32 to vector<8x1xf32>
    %72 = arith.divf %70, %71 : vector<8x1xf32>
    %cst_35 = arith.constant 9.99999974E-6 : f32
    %73 = vector.broadcast %cst_35 : f32 to vector<8x1xf32>
    %74 = arith.addf %72, %73 : vector<8x1xf32>
    %75 = math.rsqrt %74 : vector<8x1xf32>
    %76 = vector.broadcast %75 : vector<8x1xf32> to vector<8x32xf32>
    %77 = arith.mulf %67, %76 : vector<8x32xf32>
    %c0_36 = arith.constant 0 : index
    %c0_37 = arith.constant 0 : index
    %c0_38 = arith.constant 0 : index
    %78 = vector.load %arg6[%c0_36, %c0_37, %c0_38] : memref<1x8x32xf32, #tpu.memory_space<vmem>>, vector<1x8x32xf32>
    %79 = vector.shape_cast %78 : vector<1x8x32xf32> to vector<8x32xf32>
    %80 = vector.shape_cast %77 : vector<8x32xf32> to vector<1x8x32xf32>
    tpu.vector_store %arg6[%c0_36, %c0_37, %c0_38], %80 {strides = array<i32>} : memref<1x8x32xf32, #tpu.memory_space<vmem>>, vector<1x8x32xf32>,
    return
  }
  func.func @transform_0(%arg0: i32) -> (i32, i32, i32) {
    %c0_i32 = arith.constant 0 : i32
    %c0_i32_0 = arith.constant 0 : i32
    %c0_i32_1 = arith.constant 0 : i32
    return %arg0, %c0_i32, %c0_i32_0 : i32, i32, i32
  }
  func.func @transform_1(%arg0: i32) -> (i32, i32, i32) {
    %c0_i32 = arith.constant 0 : i32
    %c0_i32_0 = arith.constant 0 : i32
    %c0_i32_1 = arith.constant 0 : i32
    %c0_i32_2 = arith.constant 0 : i32
    return %c0_i32, %c0_i32_0, %c0_i32_1 : i32, i32, i32
  }
  func.func @transform_2(%arg0: i32) -> (i32, i32, i32) {
    %c0_i32 = arith.constant 0 : i32
    %c0_i32_0 = arith.constant 0 : i32
    %c0_i32_1 = arith.constant 0 : i32
    %c0_i32_2 = arith.constant 0 : i32
    return %c0_i32, %c0_i32_0, %c0_i32_1 : i32, i32, i32
  }
  func.func @transform_3(%arg0: i32) -> (i32, i32) {
    %c0_i32 = arith.constant 0 : i32
    %c0_i32_0 = arith.constant 0 : i32
    %c0_i32_1 = arith.constant 0 : i32
    return %c0_i32, %c0_i32_0 : i32, i32
  }
  func.func @transform_4(%arg0: i32) -> (i32, i32) {
    %c0_i32 = arith.constant 0 : i32
    %c0_i32_0 = arith.constant 0 : i32
    %c0_i32_1 = arith.constant 0 : i32
    return %c0_i32, %c0_i32_0 : i32, i32
  }
  func.func @transform_5(%arg0: i32) -> (i32, i32, i32) {
    %c0_i32 = arith.constant 0 : i32
    %c0_i32_0 = arith.constant 0 : i32
    %c0_i32_1 = arith.constant 0 : i32
    return %arg0, %c0_i32, %c0_i32_0 : i32, i32, i32
  }
  func.func @transform_6(%arg0: i32) -> (i32, i32, i32, i32) {
    %c0_i32 = arith.constant 0 : i32
    %c0_i32_0 = arith.constant 0 : i32
    %c0_i32_1 = arith.constant 0 : i32
    %c0_i32_2 = arith.constant 0 : i32
    return %arg0, %c0_i32, %c0_i32_0, %c0_i32_1 : i32, i32, i32, i32
  }
}

</mosaic_0001>

<bundles_post_ra>
// kernel: tpu_custom_call.1
= control target key start
LH: loop header
LB: loop body
LE: loop exit
PB: predicated region body
PF: predicated region fallthrough
CT: control target
= control target key end

     0   :  { %12 = vsyncpa [#allocation3], 0  ;;  %s6651_s0 = inlined_call_operand.vmem [shape: f32[2,8,32], index: 0, kind: input, shape index: {}]   ;;  %s6652_s1 = inlined_call_operand.vmem [shape: bf16[8,32,192], index: 1, kind: input, shape index: {}]   ;;  %s6653_s2 = inlined_call_operand.vmem [shape: bf16[8,64,32], index: 2, kind: input, shape index: {}]   ;;  %s6654_s3 = inlined_call_operand.vmem [shape: bf16[32,2048], index: 3, kind: input, shape index: {}]   ;;  %s6655_s4 = inlined_call_operand.vmem [shape: bf16[2048,32], index: 4, kind: input, shape index: {}]   ;;  %s6656_s5 = inlined_call_operand.hbm [shape: f32[2,8,32], index: 5, kind: output, shape index: {0}]   ;;  %s6657_s6 = inlined_call_operand.hbm [shape: f32[2,8,8,8], index: 6, kind: output, shape index: {1}]  }
   0x1   :  { %14 = vsyncpa [#allocation3 + $0x1], 0 }
   0x2   :  { %15 = vsyncpa [#allocation5], 0 }
   0x3   :  { %17 = vsyncpa [#allocation5 + $0x1], 0  ;;  %s5503_s21 = smov 0   ;;  %s5505_s22 = smov 0  }
   0x4   :  { %s5507_s23 = smov 0   ;;  %s5509_s24 = smov 0  }
   0x5 LB: > { %s5524_s25 = sadd.s32 4294967295, %s5458_s24   ;;  %s4354_s26 = sadd.s32 4294967294, %s5458_s24   ;;  %s5458_s24 = sphi %s5509_s24, %s6663_s24   ;;  %s5454_s23 = sphi %s5507_s23, %s6662_s23   ;;  %s5450_s22 = sphi %s5505_s22, %s6661_s22   ;;  %s5446_s21 = sphi %s5503_s21, %s6660_s21  }
   0x6   : > { %s5528_s27 = sadd.s32 1, %s5458_s24   ;;  %s140_s28 = sadd.s32 1, %s5454_s23 }
   0x7   : > { %s137_s29 = ssub.s32 %s5458_s24, %s5528_s27  ;;  %p150_p0 = scmp.ne.s32.totalorder %s5454_s23, %s5450_s22 }
   0x8   : > { %p138_p1 = scmp.eq.s32.totalorder %s137_s29, 0  ;;  %p151_p2 = scmp.eq.s32.totalorder %s5524_s25, 1 }
   0x9   : > { %p156_p3 = scmp.ne.s32.totalorder %s5450_s22, %s5446_s21  ;;  %p157_p4 = scmp.eq.s32.totalorder %s4354_s26, 1 }
   0xa   : > { %s5539_s30 = scalar_select %p138_p1, %s5454_s23, %s140_s28  }
   0xb   : > { %p5541_p5 = por %p151_p2, %p150_p0  ;;  %p5545_p6 = por %p157_p4, %p156_p3 }
   0xc   : > { %p4357_p7 = scmp.ge.s32.totalorder %s5458_s24, 1  ;;  %p220_p8 = scmp.lt.s32.totalorder %s5458_s24, 3 }
   0xe   : > { %p221_p9 = pnand %p4357_p7, %p220_p8 }
   0xf   : > { %p254_p10 = scmp.lt.s32.totalorder (!%p221_p9), %s5524_s25, 1  ;;  %s5463_s26 = smov (!%p221_p9), 64  }
  0x10   : > { %224 = sbr.rel (%p221_p9) target bundleno = 2423 (0x977), region = 40  ;;  %s5823_s28 = sand.u32 (!%p221_p9), 1, %s5450_s22  }
  0x11   : > { %s4359_s29 = sshll.u32 (!%p221_p9), %s5823_s28, 6  ;;  %s4632_s10 = sshll.u32 (!%p221_p9), %s5524_s25, 10 }
  0x12   : > { %s6590_s13 = scalar_lea.hbm (!%p221_p9), %s6657_s6, %s4632_s10  ;;  %s4234_s15 = scalar_lea.sflag (!%p221_p9), [#allocation5], %s5823_s28 }
  0x15   : > { %v5123_v0 = vld [vmem:[%s6652_s1 + $0x14] ss:$8 sps:$4 sm:$0xff]   ;;  %v5460_v2 = vmov 0   ;;  %v5127_v3 = vld [vmem:[%s6652_s1 + $0x10] ss:$8 sps:$4 sm:$0xff]   ;;  %s255_s17 = scalar_select %p254_p10, %s5524_s25, 1 }
  0x16   : > { %v5125_v1 = vld [vmem:[%s6652_s1 + $0x34] ss:$8 sps:$4 sm:$0xff]   ;;  %349 = vmatprep.mubr.bf16.mxu0 %v5460_v2  ;;  %410 = vmatprep.mubr.bf16.mxu1 %v5460_v2  ;;  %v5128_v4 = vld [vmem:[%s6652_s1 + $0x30] ss:$8 sps:$4 sm:$0xff]   ;;  %v5129_v5 = vld [vmem:[%s6652_s1 + $0x4] ss:$8 sps:$4 sm:$0xff]  }
  0x17   : > { %329 = vmatprep.subr.bf16.mxu0 %v5123_v0  ;;  %390 = vmatprep.subr.bf16.mxu1 %v5125_v1  ;;  %v5131_v6 = vld [vmem:[%s6652_s1 + $0x24] ss:$8 sps:$4 sm:$0xff]   ;;  %v5133_v7 = vld [vmem:[%s6652_s1] ss:$8 sps:$4 sm:$0xff]   ;;  %s4360_s9 = sshll.u32 %s255_s17, 3  ;;  %vm313_vm0 = vcmask 261120  }
  0x18   : > { %330 = vmatpush1.bf16.msra.mxu0 %v5127_v3  ;;  %391 = vmatpush1.bf16.msra.mxu1 %v5128_v4  ;;  %v5134_v8 = vld [vmem:[%s6652_s1 + $0x20] ss:$8 sps:$4 sm:$0xff]   ;;  %s5582_s14 = scalar_lea.vmem %s6651_s0, %s4360_s9  ;;  %v5137_v10 = vld [vmem:[%s6652_s1 + $0x54] ss:$8 sps:$4 sm:$0xff]   ;;  %v5135_v12 = vld [vmem:[%s6652_s1 + $0x50] ss:$8 sps:$4 sm:$0xff]  }
  0x19   : > { %331 = vmatprep.subr.bf16.mxu0 %v5129_v5  ;;  %392 = vmatprep.subr.bf16.mxu1 %v5131_v6  ;;  %v259_v9 = vld [vmem:[%s5582_s14] sm:$0xff]  ;;  %v5141_v14 = vld [vmem:[%s6652_s1 + $0x70] ss:$8 sps:$4 sm:$0xff]   ;;  %v5143_v15 = vld [vmem:[%s6652_s1 + $0x74] ss:$8 sps:$4 sm:$0xff]   ;;  %v5461_v35 = vmov 0.0  }
  0x1a   : > { %v5588_v11 = vpack.c.bf16 %v259_v9, %v259_v9  ;;  %v5140_v13 = vld [vmem:[%s6652_s1 + $0x44] ss:$8 sps:$4 sm:$0xff]   ;;  %v5138_v17 = vld [vmem:[%s6652_s1 + $0x40] ss:$8 sps:$4 sm:$0xff]   ;;  %v5149_v19 = vld [vmem:[%s6652_s1 + $0x94] ss:$8 sps:$4 sm:$0xff]  }
  0x1b   : > { %v5146_v16 = vld [vmem:[%s6652_s1 + $0x64] ss:$8 sps:$4 sm:$0xff]   ;;  %v5144_v18 = vld [vmem:[%s6652_s1 + $0x60] ss:$8 sps:$4 sm:$0xff]   ;;  %v5155_v20 = vld [vmem:[%s6652_s1 + $0xb4] ss:$8 sps:$4 sm:$0xff]  }
  0x1c   : > { %332 = vmatpush1.bf16.msra.mxu0 %v5133_v7  ;;  %393 = vmatpush1.bf16.msra.mxu1 %v5134_v8  ;;  %v5147_v21 = vld [vmem:[%s6652_s1 + $0x90] ss:$8 sps:$4 sm:$0xff]   ;;  %v5152_v22 = vld [vmem:[%s6652_s1 + $0x84] ss:$8 sps:$4 sm:$0xff]   ;;  %v5150_v25 = vld [vmem:[%s6652_s1 + $0x80] ss:$8 sps:$4 sm:$0xff]  }
  0x1d   : > { %451 = vmatprep.subr.bf16.mxu0 %v5137_v10  ;;  %512 = vmatprep.subr.bf16.mxu1 %v5143_v15  ;;  %v5153_v23 = vld [vmem:[%s6652_s1 + $0xb0] ss:$8 sps:$4 sm:$0xff]   ;;  %v5158_v24 = vld [vmem:[%s6652_s1 + $0xa4] ss:$8 sps:$4 sm:$0xff]   ;;  %v5156_v26 = vld [vmem:[%s6652_s1 + $0xa0] ss:$8 sps:$4 sm:$0xff]  }
  0x1e   : > { %v5161_v27 = vld [vmem:[%s6652_s1 + $0xd4] ss:$8 sps:$4 sm:$0xff]   ;;  %v5159_v29 = vld [vmem:[%s6652_s1 + $0xd0] ss:$8 sps:$4 sm:$0xff]   ;;  %v5164_v30 = vld [vmem:[%s6652_s1 + $0xc4] ss:$8 sps:$4 sm:$0xff]  }
  0x1f   : > { %4365 = vmatmul.mubr.msk.bf16.vlgmr.msra.gmra.mxu0 %vm313_vm0, %v5588_v11  ;;  %4370 = vmatmul.mubr.msk.bf16.vlgmr.msra.gmra.mxu1 %vm313_vm0, %v5588_v11  ;;  %v5167_v28 = vld [vmem:[%s6652_s1 + $0xf4] ss:$8 sps:$4 sm:$0xff]   ;;  %v5165_v31 = vld [vmem:[%s6652_s1 + $0xf0] ss:$8 sps:$4 sm:$0xff]   ;;  %v5170_v32 = vld [vmem:[%s6652_s1 + $0xe4] ss:$8 sps:$4 sm:$0xff]  }
  0x20   : > { %452 = vmatpush1.bf16.msra.mxu0 %v5135_v12  ;;  %513 = vmatpush1.bf16.msra.mxu1 %v5141_v14  ;;  %v5162_v33 = vld [vmem:[%s6652_s1 + $0xc0] ss:$8 sps:$4 sm:$0xff]   ;;  %vm5462_vm1 = vmmov 0   ;;  %vm1310_vm2 = vcmask 1043456   ;;  %vm796_vm3 = vcmask 523264   ;;  %vm1194_vm4 = vcmask 64512  }
  0x21   : > { %453 = vmatprep.subr.bf16.mxu0 %v5140_v13  ;;  %471 = vmatprep.mubr.bf16.mxu0 %v5460_v2  ;;  %v5168_v34 = vld [vmem:[%s6652_s1 + $0xe0] ss:$8 sps:$4 sm:$0xff]   ;;  %s5826_s9 = scalar_lea.vmem [#allocation4], %s4359_s29  ;;  %s5464_s17 = smov [#allocation4]  }
  0x22   : > { %514 = vmatprep.subr.bf16.mxu1 %v5146_v16  ;;  %532 = vmatprep.mubr.bf16.mxu1 %v5460_v2  ;;  %s4260_s29 = sshll.u32 %s5826_s9, 4  ;;  %s5372_s18 = sshll.u32 %s5464_s17, 4  ;;  %s6585_s29 = int_to_ptr.vmem [resolvable:$true] %s4260_s29  ;;  %s5373_s18 = int_to_ptr.vmem [resolvable:$false] %s5372_s18 }
  0x23   : > { %s5368_s16 = scalar_lea.vmem %s6585_s29, 1024  ;;  %p5375_p0 = scmp.lt.s32.totalorder %s6585_s29, %s5373_s18 }
  0x24   : > { %454 = vmatpush1.bf16.msra.mxu0 %v5138_v17  ;;  %515 = vmatpush1.bf16.msra.mxu1 %v5144_v18  ;;  %p5369_p11 = scmp.ne.s32.totalorder %s6585_s29, %s5368_s16 }
  0x25   : > { %573 = vmatprep.subr.bf16.mxu0 %v5149_v19  ;;  %634 = vmatprep.subr.bf16.mxu1 %v5155_v20 }
  0x26   : > { %p5370_p12 = pnand %p5369_p11, %p5541_p5 }
  0x27   : > { %4375 = vmatmul.mubr.msk.bf16.vlgmr.msra.gmra.mxu0 %vm313_vm0, %v5588_v11  ;;  %4380 = vmatmul.mubr.msk.bf16.vlgmr.msra.gmra.mxu1 %vm313_vm0, %v5588_v11 }
  0x28   : > { %574 = vmatpush1.bf16.msra.mxu0 %v5147_v21  ;;  %635 = vmatpush1.bf16.msra.mxu1 %v5153_v23  ;;  %p5371_p13 = pneg %p5370_p12 }
  0x29   : > { %575 = vmatprep.subr.bf16.mxu0 %v5152_v22  ;;  %593 = vmatprep.mubr.bf16.mxu0 %v5460_v2 }
  0x2a   : > { %636 = vmatprep.subr.bf16.mxu1 %v5158_v24  ;;  %654 = vmatprep.mubr.bf16.mxu1 %v5460_v2 }
  0x2c   : > { %576 = vmatpush1.bf16.msra.mxu0 %v5150_v25  ;;  %637 = vmatpush1.bf16.msra.mxu1 %v5156_v26 }
  0x2d   : > { %695 = vmatprep.subr.bf16.mxu0 %v5161_v27  ;;  %756 = vmatprep.subr.bf16.mxu1 %v5167_v28 }
  0x2f   : > { %4385 = vmatmul.mubr.msk.bf16.vlgmr.msra.gmra.mxu0 %vm313_vm0, %v5588_v11  ;;  %4390 = vmatmul.mubr.msk.bf16.vlgmr.msra.gmra.mxu1 %vm313_vm0, %v5588_v11 }
  0x30   : > { %696 = vmatpush1.bf16.msra.mxu0 %v5159_v29  ;;  %757 = vmatpush1.bf16.msra.mxu1 %v5165_v31 }
  0x31   : > { %697 = vmatprep.subr.bf16.mxu0 %v5164_v30  ;;  %715 = vmatprep.mubr.bf16.mxu0 %v5460_v2 }
  0x32   : > { %758 = vmatprep.subr.bf16.mxu1 %v5170_v32  ;;  %776 = vmatprep.mubr.bf16.mxu1 %v5460_v2 }
  0x34   : > { %698 = vmatpush1.bf16.msra.mxu0 %v5162_v33  ;;  %759 = vmatpush1.bf16.msra.mxu1 %v5168_v34 }
  0x35   : > { %4881 = vmatprep.subr.bf16.mxu0 %v5461_v35  ;;  %4887 = vmatprep.subr.bf16.mxu1 %v5461_v35 }
  0x37   : > { %4395 = vmatmul.mubr.msk.bf16.vlgmr.msra.gmra.mxu0 %vm313_vm0, %v5588_v11  ;;  %4400 = vmatmul.mubr.msk.bf16.vlgmr.msra.gmra.mxu1 %vm313_vm0, %v5588_v11 }
  0x38   : > { %4883 = vmatprep.mubr.msk.bf16.mxu0 %vm5462_vm1, %v5461_v35  ;;  %4889 = vmatprep.mubr.msk.bf16.mxu1 %vm5462_vm1, %v5461_v35 }
  0xdf   : > { %v351_v36 = vpop.f32.mrf.mxu0  ;;  %v412_v37 = vpop.f32.mrf.mxu1 }
  0xe0   : > { %v5687_v38 = vpack.c.bf16 %v351_v36, %v351_v36  ;;  %v5693_v41 = vpack.c.bf16 %v412_v37, %v412_v37 }
  0xe1   : > { %v5689_v39 = vpop.f32.mrf.mxu0  ;;  %v5691_v40 = vpop.f32.mrf.mxu1 }
  0xe2   : > { %794 = vrot.lane.b32.xlu0 %v5687_v38, %s5463_s26 }
  0xe3   : > { %v355_v42 = vpop.f32.mrf.mxu0  ;;  %v416_v43 = vpop.f32.mrf.mxu1 }
  0xe5   : > { %v356_v44 = vpop.f32.mrf.mxu0  ;;  %v417_v45 = vpop.f32.mrf.mxu1 }
  0xe6   : > { %844 = vrot.lane.b32.xlu0 %v5693_v41, %s5463_s26  ;;  %v1299_v44 = vpack.c.bf16 %v5689_v39, %v5689_v39 }
  0xe7   : > { %v473_v46 = vpop.f32.mrf.mxu0  ;;  %v534_v48 = vpop.f32.mrf.mxu1 }
  0xe8   : > { %v5699_v47 = vpack.c.bf16 %v473_v46, %v473_v46  ;;  %v5703_v51 = vpack.c.bf16 %v534_v48, %v534_v48  ;;  %v1312_v45 = vsel %vm1310_vm2, %v1299_v44, 0  ;;  %v1300_v46 = vpack.c.bf16 %v5691_v40, %v5691_v40 }
  0xe9   : > { %v475_v49 = vpop.f32.mrf.mxu0  ;;  %v536_v52 = vpop.f32.mrf.mxu1 }
  0xea   : > { %v1301_v50 = vpack.c.bf16 %v475_v49, %v475_v49  ;;  %893 = vrot.lane.b32.xlu1 %v5699_v47, %s5463_s26  ;;  %v1302_v54 = vpack.c.bf16 %v536_v52, %v536_v52  ;;  %v1358_v39 = vsel %vm1310_vm2, %v1300_v46, 0 }
  0xeb   : > { %v477_v53 = vpop.f32.mrf.mxu0  ;;  %v538_v56 = vpop.f32.mrf.mxu1 }
  0xec   : > { %v5706_v55 = vsel %vm1310_vm2, %v1301_v50, 0  ;;  %v5709_v58 = vsel %vm1310_vm2, %v1302_v54, 0 }
  0xed   : > { %v478_v57 = vpop.f32.mrf.mxu0  ;;  %v539_v59 = vpop.f32.mrf.mxu1 }
  0xee   : > { %942 = vrot.lane.b32.xlu1 %v5703_v51, %s5463_s26 }
  0xef   : > { %v595_v60 = vpop.f32.mrf.mxu0  ;;  %v656_v62 = vpop.f32.mrf.mxu1 }
  0xf0   : > { %v5713_v61 = vpack.c.bf16 %v595_v60, %v595_v60  ;;  %v5715_v0 = vpack.c.bf16 %v656_v62, %v656_v62 }
  0xf1   : > { %v597_v63 = vpop.f32.mrf.mxu0  ;;  %v658_v3 = vpop.f32.mrf.mxu1 }
  0xf2   : > { %v1303_v1 = vpack.c.bf16 %v597_v63, %v597_v63  ;;  %991 = vrot.lane.b32.xlu0 %v5713_v61, %s5463_s26  ;;  %v1304_v5 = vpack.c.bf16 %v658_v3, %v658_v3  ;;  %1040 = vrot.lane.b32.xlu1 %v5715_v0, %s5463_s26 }
  0xf3   : > { %v599_v4 = vpop.f32.mrf.mxu0  ;;  %v660_v7 = vpop.f32.mrf.mxu1 }
  0xf4   : > { %v5722_v6 = vsel %vm1310_vm2, %v1303_v1, 0  ;;  %v5725_v9 = vsel %vm1310_vm2, %v1304_v5, 0 }
  0xf5   : > { %v600_v8 = vpop.f32.mrf.mxu0  ;;  %v661_v10 = vpop.f32.mrf.mxu1 }
  0xf7   : > { %v717_v11 = vpop.f32.mrf.mxu0  ;;  %v778_v13 = vpop.f32.mrf.mxu1 }
  0xf8   : > { %v5727_v12 = vpack.c.bf16 %v717_v11, %v717_v11  ;;  %v5729_v14 = vpack.c.bf16 %v778_v13, %v778_v13 }
  0xf9   : > { %v719_v15 = vpop.f32.mrf.mxu0  ;;  %v780_v17 = vpop.f32.mrf.mxu1 }
  0xfa   : > { %1089 = vrot.lane.b32.xlu0 %v5727_v12, %s5463_s26  ;;  %v1305_v16 = vpack.c.bf16 %v719_v15, %v719_v15  ;;  %1138 = vrot.lane.b32.xlu1 %v5729_v14, %s5463_s26  ;;  %v1306_v19 = vpack.c.bf16 %v780_v17, %v780_v17 }
  0xfb   : > { %v721_v18 = vpop.f32.mrf.mxu0  ;;  %v782_v21 = vpop.f32.mrf.mxu1 }
  0xfc   : > { %v5736_v20 = vsel %vm1310_vm2, %v1305_v16, 0  ;;  %v5739_v22 = vsel %vm1310_vm2, %v1306_v19, 0 }
  0xfd   : > { %v722_v23 = vpop.f32.mrf.mxu0  ;;  %v783_v24 = vpop.f32.mrf.mxu1 }
 0x154   : > { %v795_v25 = vpop.permute.xlu0 %794 }
 0x155   : > { %v801_v26 = vsel %vm796_vm3, %v795_v25, 0 }
 0x156   : > { %4882 = vmatpush3.bf16.xpose.msra.mxu0 %v801_v26 }
 0x157   : > { %4893 = vmatprep.subr.bf16.mxu0 %v5461_v35 }
 0x158   : > { %v845_v27 = vpop.permute.xlu0 %844 }
 0x159   : > { %v850_v28 = vsel %vm796_vm3, %v845_v27, 0 }
 0x15a   : > { %4888 = vmatpush3.bf16.xpose.msra.mxu1 %v850_v28 }
 0x15b   : > { %4899 = vmatprep.subr.bf16.mxu1 %v5461_v35 }
 0x15c   : > { %v894_v29 = vpop.permute.xlu1 %893 }
 0x15d   : > { %v899_v30 = vsel %vm796_vm3, %v894_v29, 0  ;;  %4884 = vmatmul.mubr.msk.bf16.vlgmr.msra.gmra.mxu0 %vm796_vm3, %v5687_v38 }
 0x15e   : > { %4894 = vmatpush3.bf16.xpose.msra.mxu0 %v899_v30  ;;  %4895 = vmatprep.mubr.msk.bf16.mxu0 %vm5462_vm1, %v5461_v35 }
 0x15f   : > { %4905 = vmatprep.subr.bf16.mxu0 %v5461_v35 }
 0x160   : > { %v943_v31 = vpop.permute.xlu1 %942 }
 0x161   : > { %v948_v32 = vsel %vm796_vm3, %v943_v31, 0  ;;  %4890 = vmatmul.mubr.msk.bf16.vlgmr.msra.gmra.mxu1 %vm796_vm3, %v5693_v41 }
 0x162   : > { %4900 = vmatpush3.bf16.xpose.msra.mxu1 %v948_v32  ;;  %4901 = vmatprep.mubr.msk.bf16.mxu1 %vm5462_vm1, %v5461_v35 }
 0x163   : > { %4911 = vmatprep.subr.bf16.mxu1 %v5461_v35 }
 0x164   : > { %v992_v33 = vpop.permute.xlu0 %991  ;;  %v1041_v36 = vpop.permute.xlu1 %1040 }
 0x165   : > { %v997_v34 = vsel %vm796_vm3, %v992_v33, 0  ;;  %4896 = vmatmul.mubr.msk.bf16.vlgmr.msra.gmra.mxu0 %vm796_vm3, %v5699_v47  ;;  %v1046_v37 = vsel %vm796_vm3, %v1041_v36, 0 }
 0x166   : > { %4906 = vmatpush3.bf16.xpose.msra.mxu0 %v997_v34  ;;  %4907 = vmatprep.mubr.msk.bf16.mxu0 %vm5462_vm1, %v5461_v35 }
 0x167   : > { %4917 = vmatprep.subr.bf16.mxu0 %v5461_v35 }
 0x169   : > { %4902 = vmatmul.mubr.msk.bf16.vlgmr.msra.gmra.mxu1 %vm796_vm3, %v5703_v51 }
 0x16a   : > { %4912 = vmatpush3.bf16.xpose.msra.mxu1 %v1046_v37  ;;  %4913 = vmatprep.mubr.msk.bf16.mxu1 %vm5462_vm1, %v5461_v35 }
 0x16b   : > { %4923 = vmatprep.subr.bf16.mxu1 %v5461_v35 }
 0x16c   : > { %v1090_v38 = vpop.permute.xlu0 %1089  ;;  %v1139_v42 = vpop.permute.xlu1 %1138 }
 0x16d   : > { %v1095_v41 = vsel %vm796_vm3, %v1090_v38, 0  ;;  %4908 = vmatmul.mubr.msk.bf16.vlgmr.msra.gmra.mxu0 %vm796_vm3, %v5713_v61  ;;  %v1144_v43 = vsel %vm796_vm3, %v1139_v42, 0 }
 0x16e   : > { %4918 = vmatpush3.bf16.xpose.msra.mxu0 %v1095_v41  ;;  %4919 = vmatprep.mubr.msk.bf16.mxu0 %vm5462_vm1, %v5461_v35 }
 0x16f   : > { %4929 = vmatprep.subr.bf16.mxu0 %v5461_v35 }
 0x171   : > { %4914 = vmatmul.mubr.msk.bf16.vlgmr.msra.gmra.mxu1 %vm796_vm3, %v5715_v0 }
 0x172   : > { %4924 = vmatpush3.bf16.xpose.msra.mxu1 %v1144_v43  ;;  %4925 = vmatprep.mubr.msk.bf16.mxu1 %vm5462_vm1, %v5461_v35 }
 0x173   : > { %4935 = vmatprep.subr.bf16.mxu1 %v5461_v35 }
 0x175   : > { %4920 = vmatmul.mubr.msk.bf16.vlgmr.msra.gmra.mxu0 %vm796_vm3, %v5727_v12 }
 0x176   : > { %4930 = vmatpush3.bf16.msra.mxu0 %v1312_v45  ;;  %4931 = vmatprep.mubr.msk.bf16.mxu0 %vm5462_vm1, %v5461_v35 }
 0x177   : > { %4941 = vmatprep.subr.bf16.mxu0 %v5461_v35 }
 0x179   : > { %4926 = vmatmul.mubr.msk.bf16.vlgmr.msra.gmra.mxu1 %vm796_vm3, %v5729_v14 }
 0x17a   : > { %4936 = vmatpush3.bf16.msra.mxu1 %v1358_v39  ;;  %4937 = vmatprep.mubr.msk.bf16.mxu1 %vm5462_vm1, %v5461_v35 }
 0x17b   : > { %4947 = vmatprep.subr.bf16.mxu1 %v5461_v35 }
 0x21d   : > { %v837_v40 = vpop.f32.mrf.mxu0 }
 0x21e   : > { %v1186_v47 = vmul.f32 0.125, %v837_v40 }
 0x21f   : > { %v4885_v48 = vpop.f32.mrf.mxu0 }
 0x220   : > { %v1195_v49 = vsel %vm1194_vm4, %v1186_v47, -inf }
 0x221   : > { %v886_v50 = vpop.f32.mrf.mxu1  ;;  %1196 = vmax.xlane.f32.xlu0 %v1195_v49  ;;  %v840_v51 = vpop.f32.mrf.mxu0 }
 0x222   : > { %v1187_v52 = vmul.f32 0.125, %v886_v50 }
 0x223   : > { %v4886_v53 = vpop.f32.mrf.mxu0  ;;  %v4891_v54 = vpop.f32.mrf.mxu1 }
 0x224   : > { %v1198_v56 = vsel %vm1194_vm4, %v1187_v52, -inf }
 0x225   : > { %v889_v57 = vpop.f32.mrf.mxu1  ;;  %1199 = vmax.xlane.f32.xlu1 %v1198_v56  ;;  %v935_v59 = vpop.f32.mrf.mxu0 }
 0x226   : > { %v1188_v60 = vmul.f32 0.125, %v935_v59 }
 0x227   : > { %v4892_v61 = vpop.f32.mrf.mxu1  ;;  %v4897_v62 = vpop.f32.mrf.mxu0 }
 0x228   : > { %v1201_v63 = vsel %vm1194_vm4, %v1188_v60, -inf }
 0x229   : > { %v984_v0 = vpop.f32.mrf.mxu1  ;;  %1202 = vmax.xlane.f32.xlu0 %v1201_v63  ;;  %v938_v1 = vpop.f32.mrf.mxu0 }
 0x22a   : > { %v1189_v3 = vmul.f32 0.125, %v984_v0 }
 0x22b   : > { %v4898_v4 = vpop.f32.mrf.mxu0  ;;  %v4903_v5 = vpop.f32.mrf.mxu1 }
 0x22c   : > { %v1204_v7 = vsel %vm1194_vm4, %v1189_v3, -inf }
 0x22d   : > { %v987_v8 = vpop.f32.mrf.mxu1  ;;  %1205 = vmax.xlane.f32.xlu0 %v1204_v7  ;;  %v1033_v10 = vpop.f32.mrf.mxu0 }
 0x22e   : > { %v1190_v11 = vmul.f32 0.125, %v1033_v10 }
 0x22f   : > { %v4904_v12 = vpop.f32.mrf.mxu1  ;;  %v4909_v13 = vpop.f32.mrf.mxu0 }
 0x230   : > { %v1207_v14 = vsel %vm1194_vm4, %v1190_v11, -inf }
 0x231   : > { %v1082_v15 = vpop.f32.mrf.mxu1  ;;  %1208 = vmax.xlane.f32.xlu1 %v1207_v14  ;;  %v1036_v16 = vpop.f32.mrf.mxu0 }
 0x232   : > { %v1191_v17 = vmul.f32 0.125, %v1082_v15 }
 0x233   : > { %v4910_v18 = vpop.f32.mrf.mxu0  ;;  %v4915_v19 = vpop.f32.mrf.mxu1 }
 0x234   : > { %v1210_v21 = vsel %vm1194_vm4, %v1191_v17, -inf }
 0x235   : > { %v1085_v23 = vpop.f32.mrf.mxu1  ;;  %1211 = vmax.xlane.f32.xlu0 %v1210_v21  ;;  %v1131_v24 = vpop.f32.mrf.mxu0 }
 0x236   : > { %v1192_v25 = vmul.f32 0.125, %v1131_v24 }
 0x237   : > { %v4916_v26 = vpop.f32.mrf.mxu1  ;;  %v4921_v27 = vpop.f32.mrf.mxu0 }
 0x238   : > { %v1213_v28 = vsel %vm1194_vm4, %v1192_v25, -inf }
 0x239   : > { %v1180_v29 = vpop.f32.mrf.mxu1  ;;  %1214 = vmax.xlane.f32.xlu1 %v1213_v28  ;;  %v1134_v30 = vpop.f32.mrf.mxu0 }
 0x23a   : > { %v1193_v31 = vmul.f32 0.125, %v1180_v29 }
 0x23b   : > { %v4922_v32 = vpop.f32.mrf.mxu0  ;;  %v4927_v33 = vpop.f32.mrf.mxu1 }
 0x23c   : > { %v1216_v34 = vsel %vm1194_vm4, %v1193_v31, -inf }
 0x23d   : > { %v1183_v36 = vpop.f32.mrf.mxu1  ;;  %1217 = vmax.xlane.f32.xlu0 %v1216_v34 }
 0x23f   : > { %v4928_v37 = vpop.f32.mrf.mxu1 }
 0x2aa   : > { %v1197_v38 = vpop.xlane.xlu0 %1196 }
 0x2ab   : > { %v1219_v41 = vsub.f32 %v1186_v47, %v1197_v38 }
 0x2ad   : > { %v1227_v42 = vmul.f32 1.442695, %v1219_v41 }
 0x2ae   : > { %v1200_v43 = vpop.xlane.xlu1 %1199 }
 0x2af   : > { %5331 = vpow2.f32 %v1227_v42  ;;  %v1220_v44 = vsub.f32 %v1187_v52, %v1200_v43 }
 0x2b1   : > { %v1229_v45 = vmul.f32 1.442695, %v1220_v44 }
 0x2b2   : > { %v1203_v46 = vpop.xlane.xlu0 %1202 }
 0x2b3   : > { %5333 = vpow2.f32 %v1229_v45  ;;  %v1221_v39 = vsub.f32 %v1188_v60, %v1203_v46 }
 0x2b5   : > { %v1231_v40 = vmul.f32 1.442695, %v1221_v39 }
 0x2b6   : > { %v1206_v48 = vpop.xlane.xlu0 %1205 }
 0x2b7   : > { %5335 = vpow2.f32 %v1231_v40  ;;  %v1222_v49 = vsub.f32 %v1189_v3, %v1206_v48 }
 0x2b9   : > { %v1233_v50 = vmul.f32 1.442695, %v1222_v49 }
 0x2ba   : > { %v1209_v51 = vpop.xlane.xlu1 %1208 }
 0x2bb   : > { %5337 = vpow2.f32 %v1233_v50  ;;  %v1223_v53 = vsub.f32 %v1190_v11, %v1209_v51  ;;  %v5173_v50 = vld [vmem:[%s6653_s2 + $0x38] sm:$0xff]  }
 0x2bc   : > { %v5332_v54 = vpop.eup %5331 }
 0x2bd   : > { %v1235_v56 = vmul.f32 1.442695, %v1223_v53  ;;  %v1243_v47 = vsel %vm1194_vm4, %v5332_v54, 0.0  ;;  %v5174_v53 = vld [vmem:[%s6653_s2 + $0x8] sm:$0xff]  }
 0x2be   : > { %v1212_v57 = vpop.xlane.xlu0 %1211  ;;  %1244 = vadd.xlane.f32.xlu1 %v1243_v47  ;;  %v5177_v47 = vld [vmem:[%s6653_s2 + $0x28] sm:$0xff]  }
 0x2bf   : > { %5339 = vpow2.f32 %v1235_v56  ;;  %v1224_v52 = vsub.f32 %v1191_v17, %v1212_v57  ;;  %v5176_v56 = vld [vmem:[%s6653_s2] sm:$0xff]  }
 0x2c0   : > { %v5334_v59 = vpop.eup %5333  ;;  %v5178_v57 = vld [vmem:[%s6653_s2 + $0x20] sm:$0xff]  }
 0x2c1   : > { %v1237_v61 = vmul.f32 1.442695, %v1224_v52  ;;  %v1246_v60 = vsel %vm1194_vm4, %v5334_v59, 0.0 }
 0x2c2   : > { %1247 = vadd.xlane.f32.xlu0 %v1246_v60  ;;  %v1215_v62 = vpop.xlane.xlu1 %1214 }
 0x2c3   : > { %5341 = vpow2.f32 %v1237_v61  ;;  %v1225_v63 = vsub.f32 %v1192_v25, %v1215_v62 }
 0x2c4   : > { %v5336_v0 = vpop.eup %5335 }
 0x2c5   : > { %v1239_v1 = vmul.f32 1.442695, %v1225_v63  ;;  %v1249_v3 = vsel %vm1194_vm4, %v5336_v0, 0.0 }
 0x2c6   : > { %v1218_v4 = vpop.xlane.xlu0 %1217  ;;  %1250 = vadd.xlane.f32.xlu1 %v1249_v3 }
 0x2c7   : > { %5343 = vpow2.f32 %v1239_v1  ;;  %v1226_v5 = vsub.f32 %v1193_v31, %v1218_v4  ;;  %v5181_v1 = vld [vmem:[%s6653_s2 + $0x78] sm:$0xff]  }
 0x2c8   : > { %v5338_v7 = vpop.eup %5337 }
 0x2c9   : > { %v1241_v8 = vmul.f32 1.442695, %v1226_v5  ;;  %v1252_v10 = vsel %vm1194_vm4, %v5338_v7, 0.0 }
 0x2ca   : > { %1253 = vadd.xlane.f32.xlu0 %v1252_v10  ;;  %v5182_v10 = vld [vmem:[%s6653_s2 + $0x48] sm:$0xff]  }
 0x2cb   : > { %5345 = vpow2.f32 %v1241_v8 }
 0x2cc   : > { %v5340_v11 = vpop.eup %5339 }
 0x2cd   : > { %v1255_v12 = vsel %vm1194_vm4, %v5340_v11, 0.0 }
 0x2ce   : > { %1256 = vadd.xlane.f32.xlu1 %v1255_v12 }
 0x2d0   : > { %v5810_v13 = vpop.eup %5341 }
 0x2d1   : > { %v1258_v14 = vsel %vm1194_vm4, %v5810_v13, 0.0 }
 0x2d2   : > { %1259 = vadd.xlane.f32.xlu0 %v1258_v14 }
 0x2d4   : > { %v5814_v15 = vpop.eup %5343 }
 0x2d5   : > { %v1261_v16 = vsel %vm1194_vm4, %v5814_v15, 0.0 }
 0x2d6   : > { %1262 = vadd.xlane.f32.xlu1 %v1261_v16  ;;  %v5184_v16 = vld [vmem:[%s6653_s2 + $0x40] sm:$0xff]  }
 0x2d8   : > { %v5818_v17 = vpop.eup %5345 }
 0x2d9   : > { %v1264_v18 = vsel %vm1194_vm4, %v5818_v17, 0.0 }
 0x2da   : > { %1265 = vadd.xlane.f32.xlu0 %v1264_v18 }
 0x347   : > { %v1245_v19 = vpop.xlane.xlu1 %1244 }
 0x348   : > { %5347 = vrcp.f32 %v1245_v19 }
 0x34b   : > { %v1248_v21 = vpop.xlane.xlu0 %1247 }
 0x34c   : > { %5349 = vrcp.f32 %v1248_v21 }
 0x34f   : > { %v1251_v23 = vpop.xlane.xlu1 %1250 }
 0x350   : > { %5351 = vrcp.f32 %v1251_v23 }
 0x353   : > { %v1254_v24 = vpop.xlane.xlu0 %1253 }
 0x354   : > { %5353 = vrcp.f32 %v1254_v24  ;;  %v5186_v24 = vld [vmem:[%s6653_s2 + $0x60] sm:$0xff]  }
 0x355   : > { %v5348_v25 = vpop.eup %5347 }
 0x356   : > { %v1275_v26 = vmul.f32 %v5348_v25, %v5332_v54  ;;  %v5175_v54 = vld [vmem:[%s6653_s2 + $0x30] sm:$0xff]   ;;  %v5187_v25 = vld [vmem:[%s6653_s2 + $0x98] sm:$0xff]  }
 0x357   : > { %v1257_v27 = vpop.xlane.xlu1 %1256 }
 0x358   : > { %5355 = vrcp.f32 %v1257_v27  ;;  %v1291_v28 = vpack.c.bf16 %v1275_v26, %v1275_v26  ;;  %1283 = vst.msk [vmem:[%s5826_s9] sm:$0xff] %vm1194_vm4, %v1275_v26 }
 0x359   : > { %v5350_v29 = vpop.eup %5349 }
 0x35a   : > { %4932 = vmatmul.mubr.msk.bf16.vlgmr.msra.gmra.mxu0 %vm1194_vm4, %v1291_v28  ;;  %v1276_v30 = vmul.f32 %v5350_v29, %v5334_v59  ;;  %v5179_v59 = vld [vmem:[%s6653_s2 + $0x58] sm:$0xff]  }
 0x35b   : > { %4942 = vmatpush3.bf16.msra.mxu0 %v5706_v55  ;;  %v1260_v31 = vpop.xlane.xlu0 %1259  ;;  %4943 = vmatprep.mubr.msk.bf16.mxu0 %vm5462_vm1, %v5461_v35 }
 0x35c   : > { %5357 = vrcp.f32 %v1260_v31  ;;  %v1292_v32 = vpack.c.bf16 %v1276_v30, %v1276_v30  ;;  %4953 = vmatprep.subr.bf16.mxu0 %v5461_v35  ;;  %1284 = vst.msk [vmem:[%s5826_s9 + $0x8] sm:$0xff] %vm1194_vm4, %v1276_v30  ;;  %v5188_v31 = vld [vmem:[%s6653_s2 + $0x90] sm:$0xff]  }
 0x35d   : > { %v5352_v33 = vpop.eup %5351 }
 0x35e   : > { %4938 = vmatmul.mubr.msk.bf16.vlgmr.msra.gmra.mxu1 %vm1194_vm4, %v1292_v32  ;;  %v1277_v34 = vmul.f32 %v5352_v33, %v5336_v0  ;;  %v5180_v0 = vld [vmem:[%s6653_s2 + $0x50] sm:$0xff]   ;;  %v5189_v32 = vld [vmem:[%s6653_s2 + $0xb8] sm:$0xff]  }
 0x35f   : > { %4948 = vmatpush3.bf16.msra.mxu1 %v5709_v58  ;;  %v1263_v36 = vpop.xlane.xlu1 %1262  ;;  %4949 = vmatprep.mubr.msk.bf16.mxu1 %vm5462_vm1, %v5461_v35 }
 0x360   : > { %5359 = vrcp.f32 %v1263_v36  ;;  %v1293_v55 = vpack.c.bf16 %v1277_v34, %v1277_v34  ;;  %4959 = vmatprep.subr.bf16.mxu1 %v5461_v35  ;;  %1285 = vst.msk [vmem:[%s5826_s9 + $0x10] sm:$0xff] %vm1194_vm4, %v1277_v34 }
 0x361   : > { %v5354_v37 = vpop.eup %5353 }
 0x362   : > { %4944 = vmatmul.mubr.msk.bf16.vlgmr.msra.gmra.mxu0 %vm1194_vm4, %v1293_v55  ;;  %v1278_v38 = vmul.f32 %v5354_v37, %v5338_v7 }
 0x363   : > { %4954 = vmatpush3.bf16.msra.mxu0 %v5722_v6  ;;  %v1266_v41 = vpop.xlane.xlu0 %1265  ;;  %4955 = vmatprep.mubr.msk.bf16.mxu0 %vm5462_vm1, %v5461_v35 }
 0x364   : > { %5361 = vrcp.f32 %v1266_v41  ;;  %v1294_v58 = vpack.c.bf16 %v1278_v38, %v1278_v38  ;;  %4965 = vmatprep.subr.bf16.mxu0 %v5461_v35  ;;  %1286 = vst.msk [vmem:[%s5826_s9 + $0x18] sm:$0xff] %vm1194_vm4, %v1278_v38  ;;  %v5190_v38 = vld [vmem:[%s6653_s2 + $0x88] sm:$0xff]   ;;  %v5191_v41 = vld [vmem:[%s6653_s2 + $0xb0] sm:$0xff]  }
 0x365   : > { %v5356_v42 = vpop.eup %5355 }
 0x366   : > { %4950 = vmatmul.mubr.msk.bf16.vlgmr.msra.gmra.mxu1 %vm1194_vm4, %v1294_v58  ;;  %v1279_v43 = vmul.f32 %v5356_v42, %v5340_v11  ;;  %v5183_v11 = vld [vmem:[%s6653_s2 + $0x70] sm:$0xff]  }
 0x367   : > { %4960 = vmatpush3.bf16.msra.mxu1 %v5725_v9  ;;  %4961 = vmatprep.mubr.msk.bf16.mxu1 %vm5462_vm1, %v5461_v35 }
 0x368   : > { %v1295_v6 = vpack.c.bf16 %v1279_v43, %v1279_v43  ;;  %4971 = vmatprep.subr.bf16.mxu1 %v5461_v35  ;;  %1287 = vst.msk [vmem:[%s5826_s9 + $0x20] sm:$0xff] %vm1194_vm4, %v1279_v43 }
 0x369   : > { %v5358_v44 = vpop.eup %5357 }
 0x36a   : > { %4956 = vmatmul.mubr.msk.bf16.vlgmr.msra.gmra.mxu0 %vm1194_vm4, %v1295_v6  ;;  %v1280_v45 = vmul.f32 %v5358_v44, %v5810_v13  ;;  %v5192_v44 = vld [vmem:[%s6653_s2 + $0x80] sm:$0xff]  }
 0x36b   : > { %4966 = vmatpush3.bf16.msra.mxu0 %v5736_v20  ;;  %4967 = vmatprep.mubr.msk.bf16.mxu0 %vm5462_vm1, %v5461_v35  ;;  %v5171_v20 = vld [vmem:[%s6653_s2 + $0x18] sm:$0xff]  }
 0x36c   : > { %v1296_v9 = vpack.c.bf16 %v1280_v45, %v1280_v45  ;;  %4977 = vmatprep.subr.bf16.mxu0 %v5461_v35  ;;  %1288 = vst.msk [vmem:[%s5826_s9 + $0x28] sm:$0xff] %vm1194_vm4, %v1280_v45  ;;  %v5193_v45 = vld [vmem:[%s6653_s2 + $0xa8] sm:$0xff]  }
 0x36d   : > { %v5360_v46 = vpop.eup %5359 }
 0x36e   : > { %4962 = vmatmul.mubr.msk.bf16.vlgmr.msra.gmra.mxu1 %vm1194_vm4, %v1296_v9  ;;  %v1281_v39 = vmul.f32 %v5360_v46, %v5814_v15 }
 0x36f   : > { %4972 = vmatpush3.bf16.msra.mxu1 %v5739_v22  ;;  %4973 = vmatprep.mubr.msk.bf16.mxu1 %vm5462_vm1, %v5461_v35  ;;  %v5172_v22 = vld [vmem:[%s6653_s2 + $0x10] sm:$0xff]  }
 0x370   : > { %v1297_v40 = vpack.c.bf16 %v1281_v39, %v1281_v39  ;;  %4989 = vmatprep.subr.bf16.mxu1 %v5461_v35  ;;  %1289 = vst.msk [vmem:[%s5826_s9 + $0x30] sm:$0xff] %vm1194_vm4, %v1281_v39 }
 0x371   : > { %v5362_v48 = vpop.eup %5361 }
 0x372   : > { %4968 = vmatmul.mubr.msk.bf16.vlgmr.msra.gmra.mxu0 %vm1194_vm4, %v1297_v40  ;;  %v1282_v49 = vmul.f32 %v5362_v48, %v5818_v17  ;;  %v5185_v17 = vld [vmem:[%s6653_s2 + $0x68] sm:$0xff]   ;;  %v5195_v40 = vld [vmem:[%s6653_s2 + $0xd8] sm:$0xff]  }
 0x373   : > { %4978 = vmatpush3.bf16.msra.mxu0 %v5171_v20  ;;  %4985 = vmatprep.mubr.msk.bf16.mxu0 %vm5462_vm1, %v5461_v35  ;;  %v5194_v20 = vld [vmem:[%s6653_s2 + $0xa0] sm:$0xff]  }
 0x374   : > { %v1298_v51 = vpack.c.bf16 %v1282_v49, %v1282_v49  ;;  %4979 = vmatprep.subr.bf16.mxu0 %v5461_v35  ;;  %1290 = vst.msk [vmem:[%s5826_s9 + $0x38] sm:$0xff] %vm1194_vm4, %v1282_v49  ;;  %s5374_s9 = scalar_lea.vmem %s5373_s18, 2048 }
 0x375   : > { %p5376_p1 = scmp.lt.s32.totalorder %s5374_s9, %s5368_s16 }
 0x376   : > { %4974 = vmatmul.mubr.msk.bf16.vlgmr.msra.gmra.mxu1 %vm1194_vm4, %v1298_v51 }
 0x377   : > { %4980 = vmatpush3.bf16.msra.mxu0 %v5172_v22  ;;  %4990 = vmatpush3.bf16.msra.mxu1 %v5173_v50  ;;  %v5196_v22 = vld [vmem:[%s6653_s2 + $0xd0] sm:$0xff]   ;;  %v5197_v50 = vld [vmem:[%s6653_s2 + $0xf8] sm:$0xff]   ;;  %p5377_p2 = por %p5376_p1, %p5375_p0 }
 0x378   : > { %4981 = vmatprep.subr.bf16.mxu0 %v5461_v35  ;;  %4991 = vmatprep.subr.bf16.mxu1 %v5461_v35 }
 0x379   : > { %4997 = vmatprep.mubr.msk.bf16.mxu1 %vm5462_vm1, %v5461_v35  ;;  %p5378_p3 = pnand %p5377_p2, %p5371_p13 }
 0x37b   : > { %4982 = vmatpush3.bf16.msra.mxu0 %v5174_v53  ;;  %4992 = vmatpush3.bf16.msra.mxu1 %v5175_v54  ;;  %v5198_v53 = vld [vmem:[%s6653_s2 + $0xc8] sm:$0xff]   ;;  %v5199_v54 = vld [vmem:[%s6653_s2 + $0xf0] sm:$0xff]  }
 0x37c   : > { %4983 = vmatprep.subr.bf16.mxu0 %v5461_v35  ;;  %4993 = vmatprep.subr.bf16.mxu1 %v5461_v35 }
 0x37f   : > { %4984 = vmatpush3.bf16.msra.mxu0 %v5176_v56  ;;  %4994 = vmatpush3.bf16.msra.mxu1 %v5177_v47  ;;  %v5200_v56 = vld [vmem:[%s6653_s2 + $0xc0] sm:$0xff]   ;;  %v5201_v47 = vld [vmem:[%s6653_s2 + $0xe8] sm:$0xff]  }
 0x380   : > { %4995 = vmatprep.subr.bf16.mxu1 %v5461_v35  ;;  %5001 = vmatprep.subr.bf16.mxu0 %v5461_v35 }
 0x383   : > { %4996 = vmatpush3.bf16.msra.mxu1 %v5178_v57  ;;  %v5202_v57 = vld [vmem:[%s6653_s2 + $0xe0] sm:$0xff]  }
 0x384   : > { %5013 = vmatprep.subr.bf16.mxu1 %v5461_v35 }
 0x41a   : > { %v1348_v52 = vpop.f32.mrf.mxu0 }
 0x41b   : > { %v1676_v61 = vpack.c.bf16 %v1348_v52, %v1348_v52 }
 0x41c   : > { %v4933_v60 = vpop.f32.mrf.mxu0 }
 0x41d   : > { %4986 = vmatmul.mubr.msk.bf16.vlgmr.msra.gmra.mxu0 %vm796_vm3, %v1676_v61 }
 0x41e   : > { %5002 = vmatpush3.bf16.msra.mxu0 %v5179_v59  ;;  %v1351_v62 = vpop.f32.mrf.mxu0  ;;  %v1394_v63 = vpop.f32.mrf.mxu1  ;;  %5009 = vmatprep.mubr.msk.bf16.mxu0 %vm5462_vm1, %v5461_v35 }
 0x41f   : > { %v1677_v3 = vpack.c.bf16 %v1394_v63, %v1394_v63  ;;  %5003 = vmatprep.subr.bf16.mxu0 %v5461_v35 }
 0x420   : > { %v4934_v4 = vpop.f32.mrf.mxu0  ;;  %v4939_v5 = vpop.f32.mrf.mxu1 }
 0x421   : > { %4998 = vmatmul.mubr.msk.bf16.vlgmr.msra.gmra.mxu1 %vm796_vm3, %v1677_v3 }
 0x422   : > { %5004 = vmatpush3.bf16.msra.mxu0 %v5180_v0  ;;  %5014 = vmatpush3.bf16.msra.mxu1 %v5181_v1  ;;  %v1397_v7 = vpop.f32.mrf.mxu1  ;;  %v1440_v8 = vpop.f32.mrf.mxu0 }
 0x423   : > { %5005 = vmatprep.subr.bf16.mxu0 %v5461_v35  ;;  %5015 = vmatprep.subr.bf16.mxu1 %v5461_v35  ;;  %v1678_v26 = vpack.c.bf16 %v1440_v8, %v1440_v8 }
 0x424   : > { %v4940_v12 = vpop.f32.mrf.mxu1  ;;  %v4945_v13 = vpop.f32.mrf.mxu0  ;;  %5021 = vmatprep.mubr.msk.bf16.mxu1 %vm5462_vm1, %v5461_v35 }
 0x426   : > { %5006 = vmatpush3.bf16.msra.mxu0 %v5182_v10  ;;  %5016 = vmatpush3.bf16.msra.mxu1 %v5183_v11  ;;  %v1443_v14 = vpop.f32.mrf.mxu0  ;;  %v1486_v15 = vpop.f32.mrf.mxu1 }
 0x427   : > { %5007 = vmatprep.subr.bf16.mxu0 %v5461_v35  ;;  %5017 = vmatprep.subr.bf16.mxu1 %v5461_v35  ;;  %v1679_v33 = vpack.c.bf16 %v1486_v15, %v1486_v15 }
 0x428   : > { %v4946_v18 = vpop.f32.mrf.mxu0  ;;  %v4951_v19 = vpop.f32.mrf.mxu1 }
 0x42a   : > { %5008 = vmatpush3.bf16.msra.mxu0 %v5184_v16  ;;  %5018 = vmatpush3.bf16.msra.mxu1 %v5185_v17  ;;  %v1489_v21 = vpop.f32.mrf.mxu1  ;;  %v1532_v23 = vpop.f32.mrf.mxu0 }
 0x42b   : > { %5019 = vmatprep.subr.bf16.mxu1 %v5461_v35  ;;  %5025 = vmatprep.subr.bf16.mxu0 %v5461_v35  ;;  %v1680_v48 = vpack.c.bf16 %v1532_v23, %v1532_v23 }
 0x42c   : > { %v4952_v27 = vpop.f32.mrf.mxu1  ;;  %v4957_v28 = vpop.f32.mrf.mxu0 }
 0x42d   : > { %5010 = vmatmul.mubr.msk.bf16.vlgmr.msra.gmra.mxu0 %vm796_vm3, %v1678_v26 }
 0x42e   : > { %5020 = vmatpush3.bf16.msra.mxu1 %v5186_v24  ;;  %5026 = vmatpush3.bf16.msra.mxu0 %v5187_v25  ;;  %v1535_v29 = vpop.f32.mrf.mxu0  ;;  %v1578_v30 = vpop.f32.mrf.mxu1 }
 0x42f   : > { %5027 = vmatprep.subr.bf16.mxu0 %v5461_v35  ;;  %5037 = vmatprep.subr.bf16.mxu1 %v5461_v35  ;;  %v1681_v51 = vpack.c.bf16 %v1578_v30, %v1578_v30 }
 0x430   : > { %v4958_v34 = vpop.f32.mrf.mxu0  ;;  %v4963_v36 = vpop.f32.mrf.mxu1  ;;  %5033 = vmatprep.mubr.msk.bf16.mxu0 %vm5462_vm1, %v5461_v35 }
 0x431   : > { %5022 = vmatmul.mubr.msk.bf16.vlgmr.msra.gmra.mxu1 %vm796_vm3, %v1679_v33 }
 0x432   : > { %5028 = vmatpush3.bf16.msra.mxu0 %v5188_v31  ;;  %5038 = vmatpush3.bf16.msra.mxu1 %v5189_v32  ;;  %v1581_v55 = vpop.f32.mrf.mxu1  ;;  %v1624_v37 = vpop.f32.mrf.mxu0 }
 0x433   : > { %5029 = vmatprep.subr.bf16.mxu0 %v5461_v35  ;;  %5039 = vmatprep.subr.bf16.mxu1 %v5461_v35  ;;  %v1682_v52 = vpack.c.bf16 %v1624_v37, %v1624_v37 }
 0x434   : > { %v4964_v58 = vpop.f32.mrf.mxu1  ;;  %v4969_v42 = vpop.f32.mrf.mxu0  ;;  %5045 = vmatprep.mubr.msk.bf16.mxu1 %vm5462_vm1, %v5461_v35 }
 0x436   : > { %5030 = vmatpush3.bf16.msra.mxu0 %v5190_v38  ;;  %5040 = vmatpush3.bf16.msra.mxu1 %v5191_v41  ;;  %v1627_v43 = vpop.f32.mrf.mxu0  ;;  %v1670_v6 = vpop.f32.mrf.mxu1 }
 0x437   : > { %5031 = vmatprep.subr.bf16.mxu0 %v5461_v35  ;;  %5041 = vmatprep.subr.bf16.mxu1 %v5461_v35  ;;  %v1683_v59 = vpack.c.bf16 %v1670_v6, %v1670_v6 }
 0x438   : > { %v4970_v9 = vpop.f32.mrf.mxu0  ;;  %v4975_v46 = vpop.f32.mrf.mxu1 }
 0x439   : > { %v5367_v9 = vld [vmem:[%s5582_s14] sm:$0xff] }
 0x43a   : > { %5032 = vmatpush3.bf16.msra.mxu0 %v5192_v44  ;;  %5042 = vmatpush3.bf16.msra.mxu1 %v5193_v45  ;;  %v1673_v39 = vpop.f32.mrf.mxu1 }
 0x43b   : > { %5043 = vmatprep.subr.bf16.mxu1 %v5461_v35  ;;  %5049 = vmatprep.subr.bf16.mxu0 %v5461_v35 }
 0x43c   : > { %v4976_v49 = vpop.f32.mrf.mxu1 }
 0x43d   : > { %5034 = vmatmul.mubr.msk.bf16.vlgmr.msra.gmra.mxu0 %vm796_vm3, %v1680_v48 }
 0x43e   : > { %5044 = vmatpush3.bf16.msra.mxu1 %v5194_v20  ;;  %5050 = vmatpush3.bf16.msra.mxu0 %v5195_v40 }
 0x43f   : > { %5051 = vmatprep.subr.bf16.mxu0 %v5461_v35  ;;  %5061 = vmatprep.subr.bf16.mxu1 %v5461_v35 }
 0x440   : > { %5057 = vmatprep.mubr.msk.bf16.mxu0 %vm5462_vm1, %v5461_v35 }
 0x441   : > { %5046 = vmatmul.mubr.msk.bf16.vlgmr.msra.gmra.mxu1 %vm796_vm3, %v1681_v51  ;;  %v2331_v51 = vld [vmem:[%s6654_s3 + $0x80] sm:$0xff] }
 0x442   : > { %5052 = vmatpush3.bf16.msra.mxu0 %v5196_v22  ;;  %5062 = vmatpush3.bf16.msra.mxu1 %v5197_v50 }
 0x443   : > { %5053 = vmatprep.subr.bf16.mxu0 %v5461_v35  ;;  %5063 = vmatprep.subr.bf16.mxu1 %v5461_v35 }
 0x444   : > { %5069 = vmatprep.mubr.msk.bf16.mxu1 %vm5462_vm1, %v5461_v35 }
 0x446   : > { %5054 = vmatpush3.bf16.msra.mxu0 %v5198_v53  ;;  %5064 = vmatpush3.bf16.msra.mxu1 %v5199_v54  ;;  %v2339_v53 = vld [vmem:[%s6654_s3 + $0xc0] sm:$0xff]  ;;  %v2332_v54 = vld [vmem:[%s6654_s3 + $0x88] sm:$0xff] }
 0x447   : > { %5055 = vmatprep.subr.bf16.mxu0 %v5461_v35  ;;  %5065 = vmatprep.subr.bf16.mxu1 %v5461_v35 }
 0x44a   : > { %5056 = vmatpush3.bf16.msra.mxu0 %v5200_v56  ;;  %5066 = vmatpush3.bf16.msra.mxu1 %v5201_v47  ;;  %v4474_v56 = vcombine.high %v2331_v51, %v2339_v53  ;;  %v2340_v47 = vld [vmem:[%s6654_s3 + $0xc8] sm:$0xff] }
 0x44b   : > { %5067 = vmatprep.subr.bf16.mxu1 %v5461_v35 }
 0x44c   : > { %2522 = vmatprep.subr.bf16.mxu0 %v4474_v56 }
 0x44d   : > { %5058 = vmatmul.mubr.msk.bf16.vlgmr.msra.gmra.mxu0 %vm796_vm3, %v1682_v52  ;;  %v4475_v52 = vcombine.low %v2332_v54, %v2340_v47 }
 0x44e   : > { %5068 = vmatpush3.bf16.msra.mxu1 %v5202_v57  ;;  %2542 = vmatprep.mubr.bf16.mxu0 %v5460_v2  ;;  %v4473_v57 = vcombine.low %v2331_v51, %v2339_v53  ;;  %v2330_v51 = vld [vmem:[%s6654_s3 + $0x78] sm:$0xff] }
 0x450   : > { %2523 = vmatpush1.bf16.msra.mxu0 %v4473_v57 }
 0x451   : > { %5070 = vmatmul.mubr.msk.bf16.vlgmr.msra.gmra.mxu1 %vm796_vm3, %v1683_v59  ;;  %v4476_v59 = vcombine.high %v2332_v54, %v2340_v47 }
 0x452   : > { %2583 = vmatprep.mubr.bf16.mxu1 %v5460_v2 }
 0x453   : > { %2563 = vmatprep.subr.bf16.mxu1 %v4476_v59  ;;  %v5203_v59 = vld [vmem:[%s6655_s4 + $0x78] sm:$0xff]  }
 0x454   : > { %2564 = vmatpush1.bf16.msra.mxu1 %v4475_v52 }
 0x4dd   : > { %v1809_v61 = vpop.f32.mrf.mxu0 }
 0x4de   : > { %v2284_v24 = vsel %vm313_vm0, %v1809_v61, 0.0  ;;  %v2315_v61 = vld [vmem:[%s6654_s3] sm:$0xff] }
 0x4df   : > { %v4987_v60 = vpop.f32.mrf.mxu0 }
 0x4e0   : > { %v2323_v60 = vld [vmem:[%s6654_s3 + $0x40] sm:$0xff] }
 0x4e1   : > { %v1812_v62 = vpop.f32.mrf.mxu0  ;;  %v1876_v63 = vpop.f32.mrf.mxu1 }
 0x4e2   : > { %v2285_v21 = vsel %vm313_vm0, %v1876_v63, 0.0  ;;  %v2316_v62 = vld [vmem:[%s6654_s3 + $0x8] sm:$0xff]  ;;  %v4458_v63 = vcombine.high %v2315_v61, %v2323_v60 }
 0x4e3   : > { %v4988_v0 = vpop.f32.mrf.mxu0  ;;  %v4999_v1 = vpop.f32.mrf.mxu1  ;;  %v2286_v26 = vadd.f32 %v2285_v21, %v2284_v24  ;;  %v2318_v21 = vld [vmem:[%s6654_s3 + $0x18] sm:$0xff] }
 0x4e4   : > { %v2324_v0 = vld [vmem:[%s6654_s3 + $0x48] sm:$0xff]  ;;  %v4457_v1 = vcombine.low %v2315_v61, %v2323_v60  ;;  %2524 = vmatprep.subr.bf16.mxu0 %v4458_v63  ;;  %v5204_v61 = vld [vmem:[%s6655_s4 + $0xf8] sm:$0xff]   ;;  %v5207_v63 = vld [vmem:[%s6655_s4 + $0x70] sm:$0xff]  }
 0x4e5   : > { %v1879_v3 = vpop.f32.mrf.mxu1  ;;  %v5205_v60 = vld [vmem:[%s6655_s4 + $0x38] sm:$0xff]  }
 0x4e6   : > { %v4459_v3 = vcombine.low %v2316_v62, %v2324_v0  ;;  %2525 = vmatpush1.bf16.msra.mxu0 %v4457_v1  ;;  %v5210_v1 = vld [vmem:[%s6655_s4 + $0xb0] sm:$0xff]  }
 0x4e7   : > { %v5000_v4 = vpop.f32.mrf.mxu1 }
 0x4e8   : > { %v4460_v4 = vcombine.high %v2316_v62, %v2324_v0  ;;  %v5206_v62 = vld [vmem:[%s6655_s4 + $0xb8] sm:$0xff]   ;;  %v5209_v0 = vld [vmem:[%s6655_s4 + $0x30] sm:$0xff]  }
 0x4ea   : > { %2565 = vmatprep.subr.bf16.mxu1 %v4460_v4  ;;  %v5212_v4 = vld [vmem:[%s6655_s4 + $0xe8] sm:$0xff]  }
 0x4eb   : > { %2566 = vmatpush1.bf16.msra.mxu1 %v4459_v3  ;;  %v5211_v3 = vld [vmem:[%s6655_s4 + $0x68] sm:$0xff]  }
 0x4ed   : > { %v1943_v5 = vpop.f32.mrf.mxu0 }
 0x4ee   : > { %v2287_v25 = vsel %vm313_vm0, %v1943_v5, 0.0  ;;  %v2333_v5 = vld [vmem:[%s6654_s3 + $0x90] sm:$0xff] }
 0x4ef   : > { %v5011_v35 = vpop.f32.mrf.mxu0  ;;  %v2288_v29 = vadd.f32 %v2287_v25, %v2286_v26 }
 0x4f0   : > { %v2341_v35 = vld [vmem:[%s6654_s3 + $0xd0] sm:$0xff] }
 0x4f1   : > { %v1946_v7 = vpop.f32.mrf.mxu0  ;;  %v2010_v8 = vpop.f32.mrf.mxu1 }
 0x4f2   : > { %v2289_v28 = vsel %vm313_vm0, %v2010_v8, 0.0  ;;  %v2334_v7 = vld [vmem:[%s6654_s3 + $0x98] sm:$0xff]  ;;  %v4478_v8 = vcombine.high %v2333_v5, %v2341_v35 }
 0x4f3   : > { %v5012_v10 = vpop.f32.mrf.mxu0  ;;  %v5023_v11 = vpop.f32.mrf.mxu1  ;;  %v2290_v31 = vadd.f32 %v2289_v28, %v2288_v29  ;;  %v2335_v28 = vld [vmem:[%s6654_s3 + $0xa0] sm:$0xff] }
 0x4f4   : > { %v2342_v10 = vld [vmem:[%s6654_s3 + $0xd8] sm:$0xff]  ;;  %v4477_v11 = vcombine.low %v2333_v5, %v2341_v35  ;;  %2604 = vmatprep.subr.bf16.mxu0 %v4478_v8  ;;  %v2343_v29 = vld [vmem:[%s6654_s3 + $0xe0] sm:$0xff]  ;;  %v5213_v5 = vld [vmem:[%s6655_s4 + $0x28] sm:$0xff]  }
 0x4f5   : > { %v2013_v12 = vpop.f32.mrf.mxu1  ;;  %v5214_v35 = vld [vmem:[%s6655_s4 + $0xa8] sm:$0xff]   ;;  %v5216_v8 = vld [vmem:[%s6655_s4 + $0xe0] sm:$0xff]  }
 0x4f6   : > { %v4479_v12 = vcombine.low %v2334_v7, %v2342_v10 }
 0x4f7   : > { %v5024_v13 = vpop.f32.mrf.mxu1 }
 0x4f8   : > { %v4480_v13 = vcombine.high %v2334_v7, %v2342_v10  ;;  %v5215_v7 = vld [vmem:[%s6655_s4 + $0x60] sm:$0xff]  }
 0x4f9   : > { %v5217_v10 = vld [vmem:[%s6655_s4 + $0x20] sm:$0xff]  }
 0x4fa   : > { %2645 = vmatprep.subr.bf16.mxu1 %v4480_v13  ;;  %v5220_v13 = vld [vmem:[%s6655_s4 + $0xd8] sm:$0xff]  }
 0x4fd   : > { %v2077_v14 = vpop.f32.mrf.mxu0 }
 0x4fe   : > { %v2291_v30 = vsel %vm313_vm0, %v2077_v14, 0.0 }
 0x4ff   : > { %v5035_v15 = vpop.f32.mrf.mxu0  ;;  %v2292_v33 = vadd.f32 %v2291_v30, %v2290_v31  ;;  %v2336_v30 = vld [vmem:[%s6654_s3 + $0xa8] sm:$0xff] }
 0x500   : > { %v2344_v31 = vld [vmem:[%s6654_s3 + $0xe8] sm:$0xff] }
 0x501   : > { %v2080_v16 = vpop.f32.mrf.mxu0  ;;  %v2144_v17 = vpop.f32.mrf.mxu1 }
 0x502   : > { %v2293_v32 = vsel %vm313_vm0, %v2144_v17, 0.0  ;;  %v2317_v17 = vld [vmem:[%s6654_s3 + $0x10] sm:$0xff] }
 0x503   : > { %v5036_v18 = vpop.f32.mrf.mxu0  ;;  %v5047_v19 = vpop.f32.mrf.mxu1  ;;  %v2294_v55 = vadd.f32 %v2293_v32, %v2292_v33 }
 0x504   : > { %v2325_v19 = vld [vmem:[%s6654_s3 + $0x50] sm:$0xff] }
 0x505   : > { %v2147_v23 = vpop.f32.mrf.mxu1  ;;  %v4462_v26 = vcombine.high %v2317_v17, %v2325_v19  ;;  %v4461_v32 = vcombine.low %v2317_v17, %v2325_v19  ;;  %v5224_v17 = vld [vmem:[%s6655_s4 + $0xd0] sm:$0xff]  }
 0x506   : > { %v2326_v23 = vld [vmem:[%s6654_s3 + $0x58] sm:$0xff]  ;;  %v5226_v19 = vld [vmem:[%s6655_s4 + $0x90] sm:$0xff]  }
 0x507   : > { %v5048_v27 = vpop.f32.mrf.mxu1  ;;  %v4463_v33 = vcombine.low %v2318_v21, %v2326_v23 }
 0x508   : > { %v4464_v27 = vcombine.high %v2318_v21, %v2326_v23  ;;  %v5227_v21 = vld [vmem:[%s6655_s4 + $0x48] sm:$0xff]  }
 0x509   : > { %v5228_v23 = vld [vmem:[%s6655_s4 + $0xc8] sm:$0xff]  }
 0x50d   : > { %v2211_v34 = vpop.f32.mrf.mxu0 }
 0x50e   : > { %v2295_v36 = vsel %vm313_vm0, %v2211_v34, 0.0  ;;  %v4482_v34 = vcombine.high %v2335_v28, %v2343_v29 }
 0x50f   : > { %v5059_v37 = vpop.f32.mrf.mxu0  ;;  %v2296_v38 = vadd.f32 %v2295_v36, %v2294_v55  ;;  %v4484_v36 = vcombine.high %v2336_v30, %v2344_v31  ;;  %v2319_v55 = vld [vmem:[%s6654_s3 + $0x20] sm:$0xff] }
 0x510   : > { %v2327_v37 = vld [vmem:[%s6654_s3 + $0x60] sm:$0xff] }
 0x511   : > { %v2214_v41 = vpop.f32.mrf.mxu0  ;;  %v2278_v58 = vpop.f32.mrf.mxu1 }
 0x512   : > { %v2297_v42 = vsel %vm313_vm0, %v2278_v58, 0.0  ;;  %v2328_v41 = vld [vmem:[%s6654_s3 + $0x68] sm:$0xff]  ;;  %v4481_v58 = vcombine.low %v2335_v28, %v2343_v29  ;;  %v5232_v28 = vld [vmem:[%s6655_s4 + $0xc0] sm:$0xff]  }
 0x513   : > { %v2298_v43 = vadd.f32 %v2297_v42, %v2296_v38  ;;  %v5060_v6 = vpop.f32.mrf.mxu0  ;;  %v5071_v44 = vpop.f32.mrf.mxu1  ;;  %v2320_v38 = vld [vmem:[%s6654_s3 + $0x28] sm:$0xff]  ;;  %v4483_v42 = vcombine.low %v2336_v30, %v2344_v31  ;;  %v5233_v29 = vld [vmem:[%s6655_s4] sm:$0xff]   ;;  %v5235_v31 = vld [vmem:[%s6655_s4 + $0x178] sm:$0xff]  }
 0x514   : > { %v4468_v6 = vcombine.high %v2320_v38, %v2328_v41  ;;  %v2337_v44 = vld [vmem:[%s6654_s3 + $0xb0] sm:$0xff]  ;;  %v5234_v30 = vld [vmem:[%s6655_s4 + $0x80] sm:$0xff]  }
 0x515   : > { %v2281_v45 = vpop.f32.mrf.mxu1  ;;  %v2299_v46 = vadd.f32 %v5367_v9, %v2298_v43  ;;  %v4466_v43 = vcombine.high %v2319_v55, %v2327_v37  ;;  %v2338_v9 = vld [vmem:[%s6654_s3 + $0xb8] sm:$0xff] }
 0x516   : > { %v2345_v45 = vld [vmem:[%s6654_s3 + $0xf0] sm:$0xff] }
 0x517   : > { %v5072_v39 = vpop.f32.mrf.mxu1  ;;  %v2300_v20 = vsel %vm313_vm0, %v2299_v46, 0.0  ;;  %v4485_v53 = vcombine.low %v2337_v44, %v2345_v45 }
 0x518   : > { %2301 = vadd.xlane.f32.xlu1 %v2300_v20  ;;  %v4465_v39 = vcombine.low %v2319_v55, %v2327_v37  ;;  %v4467_v20 = vcombine.low %v2320_v38, %v2328_v41 }
 0x5a1   : > { %v2302_v40 = vpop.xlane.xlu1 %2301 }
 0x5a2   : > { %v2304_v48 = vmul.f32 0.03125, %v2302_v40  ;;  %v4486_v40 = vcombine.high %v2337_v44, %v2345_v45  ;;  %v5237_v45 = vld [vmem:[%s6655_s4 + $0x138] sm:$0xff]  }
 0x5a4   : > { %v2305_v49 = vsub.f32 %v2299_v46, %v2304_v48  ;;  %v2346_v46 = vld [vmem:[%s6654_s3 + $0xf8] sm:$0xff] }
 0x5a5   : > { %v4488_v48 = vcombine.high %v2338_v9, %v2346_v46  ;;  %v4487_v54 = vcombine.low %v2338_v9, %v2346_v46  ;;  %v5238_v9 = vld [vmem:[%s6655_s4 + $0x1b8] sm:$0xff]  }
 0x5a6   : > { %v2306_v22 = vmul.f32 %v2305_v49, %v2305_v49 }
 0x5a8   : > { %v2307_v50 = vsel %vm313_vm0, %v2306_v22, 0.0  ;;  %v2329_v22 = vld [vmem:[%s6654_s3 + $0x70] sm:$0xff] }
 0x5a9   : > { %2308 = vadd.xlane.f32.xlu0 %v2307_v50  ;;  %v2322_v50 = vld [vmem:[%s6654_s3 + $0x38] sm:$0xff] }
 0x5aa   : > { %v4472_v47 = vcombine.high %v2322_v50, %v2330_v51  ;;  %v4471_v52 = vcombine.low %v2322_v50, %v2330_v51  ;;  %v5241_v51 = vld [vmem:[%s6655_s4 + $0x130] sm:$0xff]  }
 0x632   : > { %v2309_v14 = vpop.xlane.xlu0 %2308 }
 0x633   : > { %v2310_v15 = vmul.f32 0.03125, %v2309_v14  ;;  %v5221_v14 = vld [vmem:[%s6655_s4 + $0x18] sm:$0xff]  }
 0x635   : > { %v2311_v16 = vadd.f32 1e-05, %v2310_v15  ;;  %v5222_v15 = vld [vmem:[%s6655_s4 + $0x98] sm:$0xff]  }
 0x637   : > { %5363 = vrsqrt.f32 %v2311_v16  ;;  %v5223_v16 = vld [vmem:[%s6655_s4 + $0x50] sm:$0xff]  }
 0x644   : > { %v5364_v18 = vpop.eup %5363 }
 0x645   : > { %v6090_v24 = vmul.f32 %v5364_v18, %v2305_v49  ;;  %v2321_v49 = vld [vmem:[%s6654_s3 + $0x30] sm:$0xff] }
 0x646   : > { %v4470_v56 = vcombine.high %v2321_v49, %v2329_v22  ;;  %v4469_v57 = vcombine.low %v2321_v49, %v2329_v22  ;;  %v5225_v18 = vld [vmem:[%s6655_s4 + $0x10] sm:$0xff]  }
 0x647   : > { %v6094_v25 = vpack.c.bf16 %v6090_v24, %v6090_v24  ;;  %v5240_v49 = vld [vmem:[%s6655_s4 + $0x1f0] sm:$0xff]  }
 0x649   : > { %4489 = vmatmul.mubr.msk.bf16.vlgmr.msra.gmra.mxu0 %vm313_vm0, %v6094_v25  ;;  %4490 = vmatmul.mubr.msk.bf16.vlgmr.msra.gmra.mxu1 %vm313_vm0, %v6094_v25 }
 0x64a   : > { %2605 = vmatpush1.bf16.msra.mxu0 %v4477_v11  ;;  %2646 = vmatpush1.bf16.msra.mxu1 %v4479_v12  ;;  %v5218_v11 = vld [vmem:[%s6655_s4 + $0xa0] sm:$0xff]   ;;  %v5219_v12 = vld [vmem:[%s6655_s4 + $0x58] sm:$0xff]  }
 0x64b   : > { %2606 = vmatprep.subr.bf16.mxu0 %v4462_v26  ;;  %2647 = vmatprep.subr.bf16.mxu1 %v4464_v27  ;;  %v5230_v26 = vld [vmem:[%s6655_s4 + $0x88] sm:$0xff]   ;;  %v5231_v27 = vld [vmem:[%s6655_s4 + $0x40] sm:$0xff]  }
 0x64c   : > { %2624 = vmatprep.mubr.bf16.mxu0 %v5460_v2  ;;  %2665 = vmatprep.mubr.bf16.mxu1 %v5460_v2 }
 0x64e   : > { %2607 = vmatpush1.bf16.msra.mxu0 %v4461_v32  ;;  %2648 = vmatpush1.bf16.msra.mxu1 %v4463_v33  ;;  %v5236_v32 = vld [vmem:[%s6655_s4 + $0x1f8] sm:$0xff]  }
 0x64f   : > { %2686 = vmatprep.subr.bf16.mxu0 %v4482_v34  ;;  %2727 = vmatprep.subr.bf16.mxu1 %v4484_v36 }
 0x651   : > { %4491 = vmatmul.mubr.msk.bf16.vlgmr.msra.gmra.mxu0 %vm313_vm0, %v6094_v25  ;;  %4492 = vmatmul.mubr.msk.bf16.vlgmr.msra.gmra.mxu1 %vm313_vm0, %v6094_v25 }
 0x652   : > { %2687 = vmatpush1.bf16.msra.mxu0 %v4481_v58  ;;  %2728 = vmatpush1.bf16.msra.mxu1 %v4483_v42 }
 0x653   : > { %2688 = vmatprep.subr.bf16.mxu0 %v4466_v43  ;;  %2729 = vmatprep.subr.bf16.mxu1 %v4468_v6 }
 0x654   : > { %2706 = vmatprep.mubr.bf16.mxu0 %v5460_v2  ;;  %2747 = vmatprep.mubr.bf16.mxu1 %v5460_v2 }
 0x656   : > { %2689 = vmatpush1.bf16.msra.mxu0 %v4465_v39  ;;  %2730 = vmatpush1.bf16.msra.mxu1 %v4467_v20 }
 0x657   : > { %2768 = vmatprep.subr.bf16.mxu0 %v4486_v40  ;;  %2809 = vmatprep.subr.bf16.mxu1 %v4488_v48  ;;  %v5239_v48 = vld [vmem:[%s6655_s4 + $0x170] sm:$0xff]  }
 0x659   : > { %4493 = vmatmul.mubr.msk.bf16.vlgmr.msra.gmra.mxu0 %vm313_vm0, %v6094_v25  ;;  %4494 = vmatmul.mubr.msk.bf16.vlgmr.msra.gmra.mxu1 %vm313_vm0, %v6094_v25 }
 0x65a   : > { %2769 = vmatpush1.bf16.msra.mxu0 %v4485_v53  ;;  %2810 = vmatpush1.bf16.msra.mxu1 %v4487_v54  ;;  %v5242_v53 = vld [vmem:[%s6655_s4 + $0x1b0] sm:$0xff]  }
 0x65b   : > { %2770 = vmatprep.subr.bf16.mxu0 %v4470_v56  ;;  %2811 = vmatprep.subr.bf16.mxu1 %v4472_v47  ;;  %v5243_v47 = vld [vmem:[%s6655_s4 + $0x168] sm:$0xff]  }
 0x65c   : > { %2788 = vmatprep.mubr.bf16.mxu0 %v5460_v2  ;;  %2829 = vmatprep.mubr.bf16.mxu1 %v5460_v2  ;;  %v5208_v2 = vld [vmem:[%s6655_s4 + $0xf0] sm:$0xff]  }
 0x65e   : > { %2771 = vmatpush1.bf16.msra.mxu0 %v4469_v57  ;;  %2812 = vmatpush1.bf16.msra.mxu1 %v4471_v52  ;;  %v5244_v57 = vld [vmem:[%s6655_s4 + $0x1e8] sm:$0xff]  }
 0x65f   : > { %4705 = vmatprep.subr.bf16.mxu0 %v5203_v59  ;;  %4727 = vmatprep.subr.bf16.mxu1 %v5204_v61 }
 0x661   : > { %4495 = vmatmul.mubr.msk.bf16.vlgmr.msra.gmra.mxu0 %vm313_vm0, %v6094_v25  ;;  %4496 = vmatmul.mubr.msk.bf16.vlgmr.msra.gmra.mxu1 %vm313_vm0, %v6094_v25  ;;  %v5229_v25 = vld [vmem:[%s6655_s4 + $0x8] sm:$0xff]  }
 0x662   : > { %4706 = vmatpush3.bf16.msra.mxu0 %v5205_v60  ;;  %4728 = vmatpush3.bf16.msra.mxu1 %v5206_v62 }
 0x663   : > { %4707 = vmatprep.subr.bf16.mxu0 %v5207_v63  ;;  %4729 = vmatprep.subr.bf16.mxu1 %v5208_v2  ;;  %v5245_v2 = vld [vmem:[%s6655_s4 + $0x128] sm:$0xff]  }
 0x666   : > { %4708 = vmatpush3.bf16.msra.mxu0 %v5209_v0  ;;  %4730 = vmatpush3.bf16.msra.mxu1 %v5210_v1  ;;  %v5246_v0 = vld [vmem:[%s6655_s4 + $0x1a8] sm:$0xff]  }
 0x667   : > { %4709 = vmatprep.subr.bf16.mxu0 %v5211_v3  ;;  %4731 = vmatprep.subr.bf16.mxu1 %v5212_v4  ;;  %v5247_v4 = vld [vmem:[%s6655_s4 + $0x160] sm:$0xff]  }
 0x66a   : > { %4710 = vmatpush3.bf16.msra.mxu0 %v5213_v5  ;;  %4732 = vmatpush3.bf16.msra.mxu1 %v5214_v35  ;;  %v5248_v5 = vld [vmem:[%s6655_s4 + $0x1e0] sm:$0xff]  }
 0x66b   : > { %4711 = vmatprep.subr.bf16.mxu0 %v5215_v7  ;;  %4733 = vmatprep.subr.bf16.mxu1 %v5216_v8  ;;  %v5249_v8 = vld [vmem:[%s6655_s4 + $0x120] sm:$0xff]  }
 0x66e   : > { %4712 = vmatpush3.bf16.msra.mxu0 %v5217_v10  ;;  %4734 = vmatpush3.bf16.msra.mxu1 %v5218_v11  ;;  %v5250_v10 = vld [vmem:[%s6655_s4 + $0x1a0] sm:$0xff]  }
 0x66f   : > { %4713 = vmatprep.subr.bf16.mxu0 %v5219_v12  ;;  %4735 = vmatprep.subr.bf16.mxu1 %v5220_v13  ;;  %v5251_v13 = vld [vmem:[%s6655_s4 + $0x158] sm:$0xff]  }
 0x672   : > { %4714 = vmatpush3.bf16.msra.mxu0 %v5221_v14  ;;  %4736 = vmatpush3.bf16.msra.mxu1 %v5222_v15  ;;  %v5252_v14 = vld [vmem:[%s6655_s4 + $0x1d8] sm:$0xff]  }
 0x673   : > { %4715 = vmatprep.subr.bf16.mxu0 %v5223_v16  ;;  %4737 = vmatprep.subr.bf16.mxu1 %v5224_v17  ;;  %v5253_v17 = vld [vmem:[%s6655_s4 + $0x118] sm:$0xff]  }
 0x676   : > { %4716 = vmatpush3.bf16.msra.mxu0 %v5225_v18  ;;  %4738 = vmatpush3.bf16.msra.mxu1 %v5226_v19  ;;  %v5254_v18 = vld [vmem:[%s6655_s4 + $0x198] sm:$0xff]  }
 0x677   : > { %4717 = vmatprep.subr.bf16.mxu0 %v5227_v21  ;;  %4739 = vmatprep.subr.bf16.mxu1 %v5228_v23  ;;  %v5255_v23 = vld [vmem:[%s6655_s4 + $0x150] sm:$0xff]  }
 0x67a   : > { %4718 = vmatpush3.bf16.msra.mxu0 %v5229_v25  ;;  %4740 = vmatpush3.bf16.msra.mxu1 %v5230_v26  ;;  %v5256_v25 = vld [vmem:[%s6655_s4 + $0x1d0] sm:$0xff]  }
 0x67b   : > { %4719 = vmatprep.subr.bf16.mxu0 %v5231_v27  ;;  %4741 = vmatprep.subr.bf16.mxu1 %v5232_v28  ;;  %v5257_v28 = vld [vmem:[%s6655_s4 + $0x110] sm:$0xff]  }
 0x67e   : > { %4720 = vmatpush3.bf16.msra.mxu0 %v5233_v29  ;;  %4742 = vmatpush3.bf16.msra.mxu1 %v5234_v30  ;;  %v5258_v29 = vld [vmem:[%s6655_s4 + $0x190] sm:$0xff]  }
 0x67f   : > { %4749 = vmatprep.subr.bf16.mxu0 %v5235_v31  ;;  %4771 = vmatprep.subr.bf16.mxu1 %v5236_v32  ;;  %v5259_v32 = vld [vmem:[%s6655_s4 + $0x148] sm:$0xff]  }
 0x709   : > { %v2544_v33 = vpop.f32.mrf.mxu0  ;;  %v2585_v34 = vpop.f32.mrf.mxu1 }
 0x70a   : > { %v2838_v36 = vmax.f32 %v2544_v33, 0.0  ;;  %v2840_v55 = vmax.f32 %v2585_v34, 0.0  ;;  %v5260_v33 = vld [vmem:[%s6655_s4 + $0x1c8] sm:$0xff]  }
 0x70b   : > { %v2546_v37 = vpop.f32.mrf.mxu0  ;;  %v2587_v38 = vpop.f32.mrf.mxu1 }
 0x70c   : > { %v2839_v41 = vmax.f32 %v2546_v37, 0.0  ;;  %v2841_v58 = vmax.f32 %v2587_v38, 0.0  ;;  %v2854_v46 = vpack.c.bf16 %v2838_v36, %v2838_v36  ;;  %v2856_v39 = vpack.c.bf16 %v2840_v55, %v2840_v55  ;;  %v5261_v55 = vld [vmem:[%s6655_s4 + $0x108] sm:$0xff]  }
 0x70d   : > { %v2548_v42 = vpop.f32.mrf.mxu0  ;;  %v2589_v43 = vpop.f32.mrf.mxu1  ;;  %v5262_v37 = vld [vmem:[%s6655_s4 + $0x188] sm:$0xff]  }
 0x70e   : > { %v2855_v6 = vpack.c.bf16 %v2839_v41, %v2839_v41  ;;  %v2857_v44 = vpack.c.bf16 %v2841_v58, %v2841_v58  ;;  %v5263_v58 = vld [vmem:[%s6655_s4 + $0x140] sm:$0xff]  }
 0x70f   : > { %v2549_v20 = vpop.f32.mrf.mxu0  ;;  %v2590_v40 = vpop.f32.mrf.mxu1  ;;  %v5264_v42 = vld [vmem:[%s6655_s4 + $0x1c0] sm:$0xff]  }
 0x710   : > { %3926 = vmatprep.mubr.bf16.mxu0 %v2855_v6  ;;  %3966 = vmatprep.mubr.bf16.mxu1 %v2857_v44  ;;  %v5265_v43 = vld [vmem:[%s6655_s4 + $0x100] sm:$0xff]   ;;  %v5269_v40 = vld [vmem:[%s6655_s4 + $0x238] sm:$0xff]  }
 0x711   : > { %v6280_v22 = vpop.f32.mrf.mxu0  ;;  %v6282_v50 = vpop.f32.mrf.mxu1  ;;  %3927 = vmatmul.mubr.bf16.vlgmr.msra.gmra.mxu0 %v2854_v46  ;;  %3967 = vmatmul.mubr.bf16.vlgmr.msra.gmra.mxu1 %v2856_v39  ;;  %v5266_v6 = vld [vmem:[%s6655_s4 + $0x180] sm:$0xff]   ;;  %v5268_v46 = vld [vmem:[%s6655_s4 + $0x2f8] sm:$0xff]  }
 0x712   : > { %4750 = vmatpush3.bf16.msra.mxu0 %v5237_v45  ;;  %4772 = vmatpush3.bf16.msra.mxu1 %v5238_v9  ;;  %v2842_v44 = vmax.f32 %v6280_v22, 0.0  ;;  %v2844_v45 = vmax.f32 %v6282_v50, 0.0  ;;  %v5267_v9 = vld [vmem:[%s6655_s4 + $0x278] sm:$0xff]  }
 0x713   : > { %v2628_v54 = vpop.f32.mrf.mxu0  ;;  %v2669_v56 = vpop.f32.mrf.mxu1  ;;  %4751 = vmatprep.subr.bf16.mxu0 %v5239_v48  ;;  %4773 = vmatprep.subr.bf16.mxu1 %v5240_v49  ;;  %v5270_v22 = vld [vmem:[%s6655_s4 + $0x2b8] sm:$0xff]  }
 0x714   : > { %v2843_v52 = vmax.f32 %v2628_v54, 0.0  ;;  %v2845_v59 = vmax.f32 %v2669_v56, 0.0  ;;  %v2858_v48 = vpack.c.bf16 %v2842_v44, %v2842_v44  ;;  %v2860_v49 = vpack.c.bf16 %v2844_v45, %v2844_v45  ;;  %v5273_v56 = vld [vmem:[%s6655_s4 + $0x230] sm:$0xff]   ;;  %v5312_v44 = vld [vmem:[%s6655_s4 + $0x3e0] sm:$0xff]  }
 0x715   : > { %v2630_v61 = vpop.f32.mrf.mxu0  ;;  %v2671_v60 = vpop.f32.mrf.mxu1  ;;  %v5313_v45 = vld [vmem:[%s6655_s4 + $0x320] sm:$0xff]  }
 0x716   : > { %v2859_v62 = vpack.c.bf16 %v2843_v52, %v2843_v52  ;;  %v2861_v63 = vpack.c.bf16 %v2845_v59, %v2845_v59  ;;  %4752 = vmatpush3.bf16.msra.mxu0 %v5241_v51  ;;  %4774 = vmatpush3.bf16.msra.mxu1 %v5242_v53  ;;  %v5271_v51 = vld [vmem:[%s6655_s4 + $0x270] sm:$0xff]   ;;  %v5276_v52 = vld [vmem:[%s6655_s4 + $0x2e8] sm:$0xff]   ;;  %v5279_v60 = vld [vmem:[%s6655_s4 + $0x260] sm:$0xff]  }
 0x717   : > { %v2631_v1 = vpop.f32.mrf.mxu0  ;;  %v2672_v3 = vpop.f32.mrf.mxu1  ;;  %4753 = vmatprep.subr.bf16.mxu0 %v5243_v47  ;;  %4775 = vmatprep.subr.bf16.mxu1 %v5244_v57  ;;  %v5272_v53 = vld [vmem:[%s6655_s4 + $0x2f0] sm:$0xff]   ;;  %v5275_v57 = vld [vmem:[%s6655_s4 + $0x268] sm:$0xff]  }
 0x718   : > { %4006 = vmatprep.mubr.bf16.mxu0 %v2859_v62  ;;  %4046 = vmatprep.mubr.bf16.mxu1 %v2861_v63  ;;  %v5274_v47 = vld [vmem:[%s6655_s4 + $0x2b0] sm:$0xff]   ;;  %v5277_v59 = vld [vmem:[%s6655_s4 + $0x228] sm:$0xff]   ;;  %v5280_v62 = vld [vmem:[%s6655_s4 + $0x2e0] sm:$0xff]  }
 0x719   : > { %v6308_v35 = vpop.f32.mrf.mxu0  ;;  %v6310_v7 = vpop.f32.mrf.mxu1  ;;  %v5278_v61 = vld [vmem:[%s6655_s4 + $0x2a8] sm:$0xff]   ;;  %v5281_v63 = vld [vmem:[%s6655_s4 + $0x220] sm:$0xff]   ;;  %v5284_v1 = vld [vmem:[%s6655_s4 + $0x2d8] sm:$0xff]  }
 0x71a   : > { %4754 = vmatpush3.bf16.msra.mxu0 %v5245_v2  ;;  %4776 = vmatpush3.bf16.msra.mxu1 %v5246_v0  ;;  %v5282_v2 = vld [vmem:[%s6655_s4 + $0x2a0] sm:$0xff]   ;;  %v5283_v0 = vld [vmem:[%s6655_s4 + $0x258] sm:$0xff]  }
 0x71b   : > { %v6318_v11 = vpop.f32.mrf.mxu0  ;;  %v6320_v12 = vpop.f32.mrf.mxu1  ;;  %4755 = vmatprep.subr.bf16.mxu0 %v5247_v4  ;;  %4777 = vmatprep.subr.bf16.mxu1 %v5248_v5  ;;  %v5285_v3 = vld [vmem:[%s6655_s4 + $0x218] sm:$0xff]   ;;  %v5287_v5 = vld [vmem:[%s6655_s4 + $0x250] sm:$0xff]  }
 0x71c   : > { %v2847_v39 = vmax.f32 %v6318_v11, 0.0  ;;  %v2849_v20 = vmax.f32 %v6320_v12, 0.0  ;;  %v5286_v4 = vld [vmem:[%s6655_s4 + $0x298] sm:$0xff]   ;;  %v5290_v11 = vld [vmem:[%s6655_s4 + $0x290] sm:$0xff]   ;;  %v5291_v12 = vld [vmem:[%s6655_s4 + $0x248] sm:$0xff]  }
 0x71d   : > { %v2712_v15 = vpop.f32.mrf.mxu0  ;;  %v2753_v16 = vpop.f32.mrf.mxu1 }
 0x71e   : > { %4756 = vmatpush3.bf16.msra.mxu0 %v5249_v8  ;;  %4778 = vmatpush3.bf16.msra.mxu1 %v5250_v10  ;;  %v2863_v50 = vpack.c.bf16 %v2847_v39, %v2847_v39  ;;  %v2865_v54 = vpack.c.bf16 %v2849_v20, %v2849_v20  ;;  %v5288_v8 = vld [vmem:[%s6655_s4 + $0x2d0] sm:$0xff]   ;;  %v5294_v15 = vld [vmem:[%s6655_s4 + $0x288] sm:$0xff]   ;;  %v5295_v16 = vld [vmem:[%s6655_s4 + $0x240] sm:$0xff]  }
 0x71f   : > { %v2713_v19 = vpop.f32.mrf.mxu0  ;;  %v2754_v21 = vpop.f32.mrf.mxu1  ;;  %4757 = vmatprep.subr.bf16.mxu0 %v5251_v13  ;;  %4779 = vmatprep.subr.bf16.mxu1 %v5252_v14  ;;  %v5289_v10 = vld [vmem:[%s6655_s4 + $0x210] sm:$0xff]   ;;  %v5292_v13 = vld [vmem:[%s6655_s4 + $0x2c8] sm:$0xff]   ;;  %v5316_v39 = vld [vmem:[%s6655_s4 + $0x3d8] sm:$0xff]  }
 0x720   : > { %v5293_v14 = vld [vmem:[%s6655_s4 + $0x208] sm:$0xff]   ;;  %v2846_v19 = vmax.f32 %v6308_v35, 0.0  ;;  %v5298_v21 = vld [vmem:[%s6655_s4 + $0x280] sm:$0xff]   ;;  %v5317_v20 = vld [vmem:[%s6655_s4 + $0x318] sm:$0xff]  }
 0x721   : > { %v6340_v26 = vpop.f32.mrf.mxu0  ;;  %v6342_v27 = vpop.f32.mrf.mxu1 }
 0x722   : > { %4758 = vmatpush3.bf16.msra.mxu0 %v5253_v17  ;;  %4780 = vmatpush3.bf16.msra.mxu1 %v5254_v18  ;;  %v5296_v17 = vld [vmem:[%s6655_s4 + $0x2c0] sm:$0xff]  }
 0x723   : > { %v6350_v30 = vpop.f32.mrf.mxu0  ;;  %v6352_v31 = vpop.f32.mrf.mxu1  ;;  %4759 = vmatprep.subr.bf16.mxu0 %v5255_v23  ;;  %4781 = vmatprep.subr.bf16.mxu1 %v5256_v25  ;;  %v5297_v18 = vld [vmem:[%s6655_s4 + $0x200] sm:$0xff]   ;;  %v5299_v23 = vld [vmem:[%s6655_s4 + $0x378] sm:$0xff]   ;;  %v2848_v25 = vmax.f32 %v6310_v7, 0.0 }
 0x724   : > { %v2853_v35 = vmax.f32 %v6352_v31, 0.0  ;;  %v5302_v7 = vld [vmem:[%s6655_s4 + $0x3b8] sm:$0xff]   ;;  %v5304_v31 = vld [vmem:[%s6655_s4 + $0x3f0] sm:$0xff]  }
 0x725   : > { %v2794_v34 = vpop.f32.mrf.mxu0  ;;  %v2835_v36 = vpop.f32.mrf.mxu1 }
 0x726   : > { %4760 = vmatpush3.bf16.msra.mxu0 %v5257_v28  ;;  %4782 = vmatpush3.bf16.msra.mxu1 %v5258_v29  ;;  %v5300_v28 = vld [vmem:[%s6655_s4 + $0x3f8] sm:$0xff]   ;;  %v2851_v29 = vmax.f32 %v6350_v30, 0.0  ;;  %v2864_v34 = vpack.c.bf16 %v2848_v25, %v2848_v25  ;;  %v5303_v30 = vld [vmem:[%s6655_s4 + $0x370] sm:$0xff]  }
 0x727   : > { %v2795_v38 = vpop.f32.mrf.mxu0  ;;  %v2836_v41 = vpop.f32.mrf.mxu1  ;;  %4761 = vmatprep.subr.bf16.mxu0 %v5259_v32  ;;  %4783 = vmatprep.subr.bf16.mxu1 %v5260_v33  ;;  %v5301_v32 = vld [vmem:[%s6655_s4 + $0x338] sm:$0xff]   ;;  %v2862_v33 = vpack.c.bf16 %v2846_v19, %v2846_v19 }
 0x728   : > { %v2867_v36 = vpack.c.bf16 %v2851_v29, %v2851_v29  ;;  %v5306_v38 = vld [vmem:[%s6655_s4 + $0x3b0] sm:$0xff]   ;;  %v5307_v41 = vld [vmem:[%s6655_s4 + $0x368] sm:$0xff]  }
 0x72a   : > { %4762 = vmatpush3.bf16.msra.mxu0 %v5261_v55  ;;  %4784 = vmatpush3.bf16.msra.mxu1 %v5262_v37  ;;  %v2869_v55 = vpack.c.bf16 %v2853_v35, %v2853_v35  ;;  %v5305_v37 = vld [vmem:[%s6655_s4 + $0x330] sm:$0xff]  }
 0x72b   : > { %4763 = vmatprep.subr.bf16.mxu0 %v5263_v58  ;;  %4785 = vmatprep.subr.bf16.mxu1 %v5264_v42  ;;  %v5308_v58 = vld [vmem:[%s6655_s4 + $0x3e8] sm:$0xff]  }
 0x72c   : > { %v5309_v42 = vld [vmem:[%s6655_s4 + $0x328] sm:$0xff]  }
 0x72e   : > { %4764 = vmatpush3.bf16.msra.mxu0 %v5265_v43  ;;  %4786 = vmatpush3.bf16.msra.mxu1 %v5266_v6  ;;  %v5310_v43 = vld [vmem:[%s6655_s4 + $0x3a8] sm:$0xff]   ;;  %v5311_v6 = vld [vmem:[%s6655_s4 + $0x360] sm:$0xff]  }
 0x72f   : > { %4793 = vmatprep.subr.bf16.mxu0 %v5267_v9  ;;  %4815 = vmatprep.subr.bf16.mxu1 %v5268_v46  ;;  %v5314_v9 = vld [vmem:[%s6655_s4 + $0x3a0] sm:$0xff]   ;;  %v5315_v46 = vld [vmem:[%s6655_s4 + $0x358] sm:$0xff]  }
 0x731   : > { %4007 = vmatmul.mubr.bf16.vlgmr.msra.gmra.mxu0 %v2858_v48  ;;  %4047 = vmatmul.mubr.bf16.vlgmr.msra.gmra.mxu1 %v2860_v49  ;;  %v5319_v48 = vld [vmem:[%s6655_s4 + $0x350] sm:$0xff]  }
 0x732   : > { %4794 = vmatpush3.bf16.msra.mxu0 %v5269_v40  ;;  %4086 = vmatprep.mubr.bf16.mxu0 %v2863_v50  ;;  %v5318_v40 = vld [vmem:[%s6655_s4 + $0x398] sm:$0xff]   ;;  %v5320_v49 = vld [vmem:[%s6655_s4 + $0x3d0] sm:$0xff]  }
 0x733   : > { %4816 = vmatpush3.bf16.msra.mxu1 %v5270_v22  ;;  %4126 = vmatprep.mubr.bf16.mxu1 %v2865_v54  ;;  %v5321_v22 = vld [vmem:[%s6655_s4 + $0x310] sm:$0xff]   ;;  %v5325_v54 = vld [vmem:[%s6655_s4 + $0x308] sm:$0xff]  }
 0x734   : > { %4795 = vmatprep.subr.bf16.mxu0 %v5271_v51  ;;  %4817 = vmatprep.subr.bf16.mxu1 %v5272_v53  ;;  %v5322_v50 = vld [vmem:[%s6655_s4 + $0x390] sm:$0xff]   ;;  %v5323_v51 = vld [vmem:[%s6655_s4 + $0x348] sm:$0xff]  }
 0x735   : > { %v5324_v53 = vld [vmem:[%s6655_s4 + $0x3c8] sm:$0xff]  }
 0x736   : > { %4796 = vmatpush3.bf16.msra.mxu0 %v5273_v56  ;;  %v5326_v56 = vld [vmem:[%s6655_s4 + $0x388] sm:$0xff]  }
 0x737   : > { %4818 = vmatpush3.bf16.msra.mxu1 %v5274_v47  ;;  %4797 = vmatprep.subr.bf16.mxu0 %v5275_v57  ;;  %v5327_v47 = vld [vmem:[%s6655_s4 + $0x340] sm:$0xff]  }
 0x738   : > { %4819 = vmatprep.subr.bf16.mxu1 %v5276_v52  ;;  %v5328_v57 = vld [vmem:[%s6655_s4 + $0x3c0] sm:$0xff]  }
 0x739   : > { %v5329_v52 = vld [vmem:[%s6655_s4 + $0x300] sm:$0xff]  }
 0x73a   : > { %4798 = vmatpush3.bf16.msra.mxu0 %v5277_v59  ;;  %v2850_v59 = vmax.f32 %v6340_v26, 0.0 }
 0x73b   : > { %4820 = vmatpush3.bf16.msra.mxu1 %v5278_v61  ;;  %4799 = vmatprep.subr.bf16.mxu0 %v5279_v60  ;;  %v5330_v61 = vld [vmem:[%s6655_s4 + $0x380] sm:$0xff]   ;;  %v2852_v60 = vmax.f32 %v6342_v27, 0.0 }
 0x73c   : > { %4821 = vmatprep.subr.bf16.mxu1 %v5280_v62  ;;  %v2866_v62 = vpack.c.bf16 %v2850_v59, %v2850_v59 }
 0x73e   : > { %4800 = vmatpush3.bf16.msra.mxu0 %v5281_v63  ;;  %v2868_v63 = vpack.c.bf16 %v2852_v60, %v2852_v60 }
 0x73f   : > { %4822 = vmatpush3.bf16.msra.mxu1 %v5282_v2  ;;  %4801 = vmatprep.subr.bf16.mxu0 %v5283_v0 }
 0x740   : > { %4823 = vmatprep.subr.bf16.mxu1 %v5284_v1 }
 0x742   : > { %4802 = vmatpush3.bf16.msra.mxu0 %v5285_v3 }
 0x743   : > { %4824 = vmatpush3.bf16.msra.mxu1 %v5286_v4  ;;  %4803 = vmatprep.subr.bf16.mxu0 %v5287_v5 }
 0x744   : > { %4825 = vmatprep.subr.bf16.mxu1 %v5288_v8 }
 0x746   : > { %4804 = vmatpush3.bf16.msra.mxu0 %v5289_v10 }
 0x747   : > { %4826 = vmatpush3.bf16.msra.mxu1 %v5290_v11  ;;  %4805 = vmatprep.subr.bf16.mxu0 %v5291_v12 }
 0x748   : > { %4827 = vmatprep.subr.bf16.mxu1 %v5292_v13 }
 0x74a   : > { %4806 = vmatpush3.bf16.msra.mxu0 %v5293_v14 }
 0x74b   : > { %4828 = vmatpush3.bf16.msra.mxu1 %v5294_v15  ;;  %4807 = vmatprep.subr.bf16.mxu0 %v5295_v16 }
 0x74c   : > { %4829 = vmatprep.subr.bf16.mxu1 %v5296_v17 }
 0x74e   : > { %4808 = vmatpush3.bf16.msra.mxu0 %v5297_v18 }
 0x74f   : > { %4830 = vmatpush3.bf16.msra.mxu1 %v5298_v21  ;;  %4837 = vmatprep.subr.bf16.mxu0 %v5299_v23 }
 0x750   : > { %4859 = vmatprep.subr.bf16.mxu1 %v5300_v28 }
 0x751   : > { %4087 = vmatmul.mubr.bf16.vlgmr.msra.gmra.mxu0 %v2862_v33 }
 0x752   : > { %4127 = vmatmul.mubr.bf16.vlgmr.msra.gmra.mxu1 %v2864_v34  ;;  %4838 = vmatpush3.bf16.msra.mxu0 %v5301_v32 }
 0x753   : > { %4166 = vmatprep.mubr.bf16.mxu0 %v2867_v36  ;;  %4860 = vmatpush3.bf16.msra.mxu1 %v5302_v7 }
 0x754   : > { %4206 = vmatprep.mubr.bf16.mxu1 %v2869_v55  ;;  %4839 = vmatprep.subr.bf16.mxu0 %v5303_v30 }
 0x755   : > { %4861 = vmatprep.subr.bf16.mxu1 %v5304_v31 }
 0x756   : > { %4840 = vmatpush3.bf16.msra.mxu0 %v5305_v37 }
 0x757   : > { %4862 = vmatpush3.bf16.msra.mxu1 %v5306_v38  ;;  %4841 = vmatprep.subr.bf16.mxu0 %v5307_v41 }
 0x758   : > { %4863 = vmatprep.subr.bf16.mxu1 %v5308_v58 }
 0x75a   : > { %4842 = vmatpush3.bf16.msra.mxu0 %v5309_v42 }
 0x75b   : > { %4864 = vmatpush3.bf16.msra.mxu1 %v5310_v43  ;;  %4843 = vmatprep.subr.bf16.mxu0 %v5311_v6 }
 0x75c   : > { %4865 = vmatprep.subr.bf16.mxu1 %v5312_v44 }
 0x75e   : > { %4844 = vmatpush3.bf16.msra.mxu0 %v5313_v45 }
 0x75f   : > { %4866 = vmatpush3.bf16.msra.mxu1 %v5314_v9  ;;  %4845 = vmatprep.subr.bf16.mxu0 %v5315_v46 }
 0x760   : > { %4867 = vmatprep.subr.bf16.mxu1 %v5316_v39 }
 0x762   : > { %4846 = vmatpush3.bf16.msra.mxu0 %v5317_v20 }
 0x763   : > { %4868 = vmatpush3.bf16.msra.mxu1 %v5318_v40  ;;  %4847 = vmatprep.subr.bf16.mxu0 %v5319_v48 }
 0x764   : > { %4869 = vmatprep.subr.bf16.mxu1 %v5320_v49 }
 0x766   : > { %4848 = vmatpush3.bf16.msra.mxu0 %v5321_v22 }
 0x767   : > { %4870 = vmatpush3.bf16.msra.mxu1 %v5322_v50  ;;  %4849 = vmatprep.subr.bf16.mxu0 %v5323_v51 }
 0x768   : > { %4871 = vmatprep.subr.bf16.mxu1 %v5324_v53 }
 0x76a   : > { %4850 = vmatpush3.bf16.msra.mxu0 %v5325_v54 }
 0x76b   : > { %4872 = vmatpush3.bf16.msra.mxu1 %v5326_v56  ;;  %4851 = vmatprep.subr.bf16.mxu0 %v5327_v47 }
 0x76c   : > { %4873 = vmatprep.subr.bf16.mxu1 %v5328_v57 }
 0x76e   : > { %4852 = vmatpush3.bf16.msra.mxu0 %v5329_v52 }
 0x76f   : > { %4874 = vmatpush3.bf16.msra.mxu1 %v5330_v61 }
 0x771   : > { %4167 = vmatmul.mubr.bf16.vlgmr.msra.gmra.mxu0 %v2866_v62 }
 0x772   : > { %4207 = vmatmul.mubr.bf16.vlgmr.msra.gmra.mxu1 %v2868_v63 }
 0x7d1   : > { %v4721_v2 = vpop.f32.mrf.mxu0  ;;  %v4743_v0 = vpop.f32.mrf.mxu1 }
 0x7d3   : > { %v4722_v1 = vpop.f32.mrf.mxu0  ;;  %v4744_v3 = vpop.f32.mrf.mxu1 }
 0x7d4   : > { %v4723_v26 = vadd.f32 %v4722_v1, %v4721_v2  ;;  %v4745_v4 = vadd.f32 %v4744_v3, %v4743_v0 }
 0x7d5   : > { %v4724_v5 = vpop.f32.mrf.mxu0  ;;  %v4746_v8 = vpop.f32.mrf.mxu1 }
 0x7d6   : > { %v3929_v10 = vadd.f32 %v4723_v26, %v6090_v24 }
 0x7d7   : > { %v4725_v11 = vpop.f32.mrf.mxu0  ;;  %v4747_v12 = vpop.f32.mrf.mxu1 }
 0x7d8   : > { %v3969_v27 = vadd.f32 %v4745_v4, %v3929_v10 }
 0x7f1   : > { %v4765_v13 = vpop.f32.mrf.mxu0  ;;  %v4787_v14 = vpop.f32.mrf.mxu1 }
 0x7f3   : > { %v4766_v15 = vpop.f32.mrf.mxu0  ;;  %v4788_v16 = vpop.f32.mrf.mxu1 }
 0x7f4   : > { %v4767_v24 = vadd.f32 %v4766_v15, %v4765_v13  ;;  %v4789_v30 = vadd.f32 %v4788_v16, %v4787_v14 }
 0x7f5   : > { %v4768_v17 = vpop.f32.mrf.mxu0  ;;  %v4790_v18 = vpop.f32.mrf.mxu1 }
 0x7f6   : > { %v4009_v34 = vadd.f32 %v4767_v24, %v3969_v27 }
 0x7f7   : > { %v4769_v19 = vpop.f32.mrf.mxu0  ;;  %v4791_v21 = vpop.f32.mrf.mxu1 }
 0x7f8   : > { %v4049_v31 = vadd.f32 %v4789_v30, %v4009_v34 }
 0x811   : > { %v4809_v23 = vpop.f32.mrf.mxu0 }
 0x812   : > { %v4831_v25 = vpop.f32.mrf.mxu1 }
 0x813   : > { %v4810_v28 = vpop.f32.mrf.mxu0 }
 0x814   : > { %v4832_v29 = vpop.f32.mrf.mxu1  ;;  %v4811_v36 = vadd.f32 %v4810_v28, %v4809_v23 }
 0x815   : > { %v4812_v35 = vpop.f32.mrf.mxu0  ;;  %v4833_v38 = vadd.f32 %v4832_v29, %v4831_v25 }
 0x816   : > { %v4834_v32 = vpop.f32.mrf.mxu1  ;;  %v4089_v55 = vadd.f32 %v4811_v36, %v4049_v31 }
 0x817   : > { %v4813_v33 = vpop.f32.mrf.mxu0 }
 0x818   : > { %v4835_v7 = vpop.f32.mrf.mxu1  ;;  %v4129_v42 = vadd.f32 %v4833_v38, %v4089_v55 }
 0x831   : > { %v4853_v37 = vpop.f32.mrf.mxu0 }
 0x832   : > { %v4875_v41 = vpop.f32.mrf.mxu1 }
 0x833   : > { %v4854_v58 = vpop.f32.mrf.mxu0 }
 0x834   : > { %v4855_v43 = vadd.f32 %v4854_v58, %v4853_v37  ;;  %v4876_v6 = vpop.f32.mrf.mxu1 }
 0x835   : > { %v4856_v44 = vpop.f32.mrf.mxu0  ;;  %v4877_v9 = vadd.f32 %v4876_v6, %v4875_v41 }
 0x836   : > { %v4169_v45 = vadd.f32 %v4855_v43, %v4129_v42  ;;  %v4878_v46 = vpop.f32.mrf.mxu1 }
 0x837   : > { %v4857_v39 = vpop.f32.mrf.mxu0 }
 0x838   : > { %v4879_v20 = vpop.f32.mrf.mxu1  ;;  %v4209_v40 = vadd.f32 %v4877_v9, %v4169_v45 }
 0x83a   : > { %v4214_v48 = vsel %vm313_vm0, %v4209_v40, 0.0 }
 0x83b   : > { %4215 = vadd.xlane.f32.xlu1 %v4214_v48 }
 0x8c4   : > { %v4216_v49 = vpop.xlane.xlu1 %4215 }
 0x8c5   : > { %v4217_v22 = vmul.f32 0.03125, %v4216_v49 }
 0x8c7   : > { %v4218_v50 = vsub.f32 %v4209_v40, %v4217_v22 }
 0x8c9   : > { %v4219_v51 = vmul.f32 %v4218_v50, %v4218_v50 }
 0x8cb   : > { %v4220_v53 = vsel %vm313_vm0, %v4219_v51, 0.0 }
 0x8cc   : > { %4221 = vadd.xlane.f32.xlu0 %v4220_v53 }
 0x8cd   : > { %5381 = shalt.err (!%p5378_p3)
}
 0x8ce   : > { %s5382_s14 = scalar_lea.hbm %s6590_s13, 1024  ;;  %s5386_s26 = scalar_lea.hbm %s6657_s6, 2048 }
 0x8cf   : > { %p5383_p4 = scmp.ne.s32.totalorder %s6590_s13, %s5382_s14  ;;  %p5387_p9 = scmp.lt.s32.totalorder %s6590_s13, %s6657_s6 }
 0x8d0   : > { %p5388_p10 = scmp.lt.s32.totalorder %s5386_s26, %s5382_s14 }
 0x8d1   : > { %p5384_p7 = pnand %p5383_p4, %p5541_p5 }
 0x8d2   : > { %p5389_p11 = por %p5388_p10, %p5387_p9 }
 0x8d3   : > { %p5385_p8 = pneg %p5384_p7 }
 0x8d5   : > { %p5390_p12 = pnand %p5389_p11, %p5385_p8 }
 0x8d7   : > { %5393 = shalt.err (!%p5390_p12)
}
 0x8d8   : > { %s5465_s12 = smov 128   ;;  %s5466_s16 = smov 8  }
 0x8d9   : > { %5074 = dma.vmem_to_hbm [thread:$0]  (%p5541_p5), %s6585_s29, 1024, %s6590_s13, %s4234_s15, %s5465_s12, %s5465_s12, %s5466_s16  }
 0x8da   : > { %s4358_s17 = sshll.u32 %s5823_s28, 3  ;;  %s4627_s18 = sshll.u32 %s5524_s25, 7 }
 0x8db   : > { %s246_s9 = scalar_lea.vmem [#allocation2], %s4358_s17  ;;  %s4245_s26 = scalar_lea.hbm %s6656_s5, %s4627_s18 }
 0x8dc   : > { %s4247_s14 = sshll.u32 %s246_s9, 4  ;;  %s4229_s10 = scalar_lea.sflag [#allocation3], %s5823_s28  ;;  %s4248_s14 = int_to_ptr.vmem [resolvable:$true] %s4247_s14 }
 0x8dd   : > { %s5394_s29 = scalar_lea.vmem %s4248_s14, 128  ;;  %s5467_s13 = smov [#allocation2]  }
 0x8de   : > { %p5395_p13 = scmp.ne.s32.totalorder %s4248_s14, %s5394_s29  ;;  %s5398_s15 = sshll.u32 %s5467_s13, 4  ;;  %s5399_s15 = int_to_ptr.vmem [resolvable:$false] %s5398_s15 }
 0x8df   : > { %s5400_s25 = scalar_lea.vmem %s5399_s15, 256  ;;  %p5401_p2 = scmp.lt.s32.totalorder %s4248_s14, %s5399_s15 }
 0x8e0   : > { %p5396_p0 = pnand %p5395_p13, %p5541_p5  ;;  %p5402_p3 = scmp.lt.s32.totalorder %s5400_s25, %s5394_s29 }
 0x8e2   : > { %p5397_p1 = pneg %p5396_p0  ;;  %p5403_p4 = por %p5402_p3, %p5401_p2 }
 0x8e4   : > { %p5404_p7 = pnand %p5403_p4, %p5397_p1 }
 0x955   : > { %v4222_v54 = vpop.xlane.xlu0 %4221 }
 0x956   : > { %v4223_v56 = vmul.f32 0.03125, %v4222_v54 }
 0x958   : > { %v4224_v47 = vadd.f32 1e-05, %v4223_v56 }
 0x95a   : > { %5365 = vrsqrt.f32 %v4224_v47 }
 0x967   : > { %v5366_v57 = vpop.eup %5365 }
 0x968   : > { %v4226_v52 = vmul.f32 %v5366_v57, %v4218_v50 }
 0x96a   : > { %4227 = vst.msk [vmem:[%s246_s9] sm:$0xff] %vm313_vm0, %v4226_v52 }
 0x96b   : > { %5407 = shalt.err (!%p5404_p7)
}
 0x96c   : > { %s5408_s11 = scalar_lea.hbm %s4245_s26, 128  ;;  %s5412_s16 = scalar_lea.hbm %s6656_s5, 256 }
 0x96d   : > { %p5409_p8 = scmp.ne.s32.totalorder %s4245_s26, %s5408_s11  ;;  %p5413_p11 = scmp.lt.s32.totalorder %s4245_s26, %s6656_s5 }
 0x96e   : > { %p5414_p12 = scmp.lt.s32.totalorder %s5412_s16, %s5408_s11 }
 0x96f   : > { %p5410_p9 = pnand %p5409_p8, %p5541_p5 }
 0x970   : > { %p5415_p13 = por %p5414_p12, %p5413_p11 }
 0x971   : > { %p5411_p10 = pneg %p5410_p9 }
 0x973   : > { %p5416_p0 = pnand %p5415_p13, %p5411_p10 }
 0x975   : > { %5419 = shalt.err (!%p5416_p0)
}
 0x976   : > { %5073 = dma.vmem_to_hbm [thread:$0]  (%p5541_p5), %s4248_s14, 128, %s4245_s26, %s4229_s10  }
 0x977 PF: > { %p5084_p1 = scmp.ge.s32.totalorder %s5458_s24, 2  ;;  %s4275_s9 = sand.u32 1, %s5446_s21  }
 0x978   : > { %s4276_s19 = scalar_lea.sflag [#allocation3], %s4275_s9 }
 0x979   : > { %p5078_p2 = pnand %p5084_p1, %p5545_p6 }
 0x97b   : > { %p5079_p3 = pneg %p5078_p2 }
 0x97d   : > { %5437 = dma.done.wait (%p5079_p3), %s4276_s19, 128  }
 0x97e   : > { %5439 = vsyncadd (%p5079_p3), %s4276_s19, 4294967168  ;;  %s4285_s20 = scalar_lea.sflag [#allocation5], %s4275_s9 }
 0x97f   : > { %5441 = dma.done.wait (%p5079_p3), %s4285_s20, 1024  }
 0x980   : > { %5443 = vsyncadd (%p5079_p3), %s4285_s20, 4294966272  ;;  %p20_p5 = scmp.ge.s32.totalorder %s5528_s27, 4   ;;  %s6660_s21 = smov %s5450_s22 }
 0x981   : > { %s6661_s22 = smov %s5454_s23  ;;  %s6662_s23 = smov %s5539_s30 }
 0x982   : > { %s6663_s24 = smov %s5528_s27  ;;  %22 = sbr.rel (!%p20_p5) target bundleno = 5 (0x5), region = 92 }
 0x987   :  { %4290 = vsyncpa [#allocation3], 1 }
 0x988   :  { %4292 = vsyncpa [#allocation3 + $0x1], 1 }
 0x989   :  { %4293 = vsyncpa [#allocation5], 1 }
 0x98a   :  { %4295 = vsyncpa [#allocation5 + $0x1], 1 }

</bundles_post_ra>
